<compile_context>
chip_gen: v7x
topology: tpu7x:2x2x1
jax: 0.10.0
libtpu: 0.0.40
codegen_flags: <defaults>
</compile_context>

<pallas_src>
import functools

import jax
import jax.numpy as jnp
import numpy as np
from jax.experimental import pallas as pl
from jax.experimental.pallas import tpu as pltpu

BN_EPS = 1e-5
KH = 5  # conv kernel height (5x5, stride 1, pad 2)


# --------------------------------------------------------------------------- #
# The single fused kernel                                                      #
# --------------------------------------------------------------------------- #
def _simplenet_kernel(xe_ref, xo_ref, w1_ref, b1t_ref, w2_ref, b2t_ref,
                      m_ref, mt_ref, gb2_ref, w1fc_ref, b1fc_ref, gb1_ref,
                      w2fc_ref, b2fc_ref, o_ref, zpad_ref, *, n, h, w, c1):
    half = h // 2          # rows after pool1 == conv2 output rows
    quarter = h // 4       # rows after pool2
    w2sp = w // 2          # cols after pool1 == conv2 output cols

    # ---- conv1: 5 banded matmuls per output-row parity, merged even/odd cols ----
    # LHS planes are (row, batch)-folded 2-D arrays; each tap is one contiguous
    # slice of 8*N rows, so the whole batch rides the MXU M dimension.
    accs = []
    for p in (0, 1):                                   # conv1 output-row parity
        acc = None
        for dy in range(KH):
            q = (p + dy) % 2
            s = (p + dy) // 2
            plane = xe_ref if q == 0 else xo_ref
            lhs = plane[s * n:(s + half) * n, :].astype(jnp.bfloat16)
            part = jnp.dot(lhs, w1_ref[dy], preferred_element_type=jnp.float32)
            acc = part if acc is None else acc + part
        accs.append(acc)                               # (half*n, 128) each

    lanes1 = accs[0].shape[1] // 2                     # (w//2) * c1
    # 2x2 max-pool = max over (row parity) x (col-parity lane halves); bias + relu
    pooled = jnp.maximum(
        jnp.maximum(accs[0][:, :lanes1], accs[0][:, lanes1:]),
        jnp.maximum(accs[1][:, :lanes1], accs[1][:, lanes1:]))
    pooled = jnp.maximum(pooled + b1t_ref[...], 0.0)   # (half*n, lanes1)

    # ---- stage pooled map into the zero-padded conv2 input scratch --------------
    # (row, batch)-folded layout makes the spatial padding plain row/lane borders.
    pad_l = 2 * c1
    zpad_ref[...] = jnp.zeros_like(zpad_ref)
    zpad_ref[2 * n:(2 + half) * n, pad_l:pad_l + lanes1] = pooled

    # ---- conv2: 5 banded matmuls, merged even/odd output columns ----------------
    acc2 = None
    for dy in range(KH):
        lhs = zpad_ref[dy * n:(dy + half) * n, :].astype(jnp.bfloat16)
        part = jnp.dot(lhs, w2_ref[dy], preferred_element_type=jnp.float32)
        acc2 = part if acc2 is None else acc2 + part
    y2 = acc2 + b2t_ref[...]                           # (half*n, 2*(w//4)*c2)

    # ---- BatchNorm2d (training mode: batch stats over N,H,W) + relu -------------
    cnt = jnp.float32(n * half * w2sp)
    lane_sum = jnp.sum(y2, axis=0, keepdims=True)
    lane_sq = jnp.sum(y2 * y2, axis=0, keepdims=True)
    ch_sum = jnp.dot(lane_sum, m_ref[...], preferred_element_type=jnp.float32)
    ch_sq = jnp.dot(lane_sq, m_ref[...], preferred_element_type=jnp.float32)
    mean = ch_sum / cnt
    var = jnp.maximum(ch_sq / cnt - mean * mean, 0.0)  # biased variance
    scale_ch = gb2_ref[0:1] * jax.lax.rsqrt(var + BN_EPS)
    shift_ch = gb2_ref[1:2] - mean * scale_ch
    scale_ln = jnp.dot(scale_ch, mt_ref[...], preferred_element_type=jnp.float32)
    shift_ln = jnp.dot(shift_ch, mt_ref[...], preferred_element_type=jnp.float32)
    y2 = jnp.maximum(y2 * scale_ln + shift_ln, 0.0)

    # ---- 2x2 max-pool with the flatten folded into fc1 --------------------------
    lanes2 = y2.shape[1] // 2                          # (w//4) * c2
    acc_fc = None
    for t in range(quarter):                           # pooled row t
        ev = y2[(2 * t) * n:(2 * t + 1) * n, :]
        od = y2[(2 * t + 1) * n:(2 * t + 2) * n, :]
        pr = jnp.maximum(jnp.maximum(ev[:, :lanes2], ev[:, lanes2:]),
                         jnp.maximum(od[:, :lanes2], od[:, lanes2:]))  # (n, lanes2)
        contrib = jnp.dot(pr, w1fc_ref[t * lanes2:(t + 1) * lanes2, :],
                          preferred_element_type=jnp.float32)          # (n, FC)
        acc_fc = contrib if acc_fc is None else acc_fc + contrib
    hfc = acc_fc + b1fc_ref[...]                       # (n, FC)

    # ---- BatchNorm1d (batch statistics) + relu ----------------------------------
    mean1 = jnp.mean(hfc, axis=0, keepdims=True)
    var1 = jnp.mean((hfc - mean1) * (hfc - mean1), axis=0, keepdims=True)
    hn = jnp.maximum((hfc - mean1) * jax.lax.rsqrt(var1 + BN_EPS) * gb1_ref[0:1]
                     + gb1_ref[1:2], 0.0)

    # ---- fc2 as a VPU multiply + lane reduction, then sigmoid --------------------
    logits = jnp.sum(hn * w2fc_ref[...], axis=1, keepdims=True) + b2fc_ref[...]
    o_ref[...] = jax.nn.sigmoid(logits).astype(o_ref.dtype)


def _full_spec(shape):
    nd = len(shape)
    return pl.BlockSpec(shape, lambda i, nd=nd: (0,) * nd)


# --------------------------------------------------------------------------- #
# Forward pass (one pallas_call)                                               #
# --------------------------------------------------------------------------- #
def simple_net_forward(x_nchw, p):
    n, c, h, w = x_nchw.shape
    c1 = p["b1t"].shape[1] // (w // 2)

    # One-time input layout (8 KB input, done once by XLA): NCHW -> NHWC -> spatial
    # pad 2 -> merged (w, c_in) lanes -> row-parity split -> (row, batch)-folded 2-D.
    xt = jnp.transpose(x_nchw, (0, 2, 3, 1))
    xp = jnp.pad(xt, ((0, 0), (2, 2), (2, 2), (0, 0)))
    xm = xp.reshape(n, h + 4, (w + 4) * c)
    rows_half = (h + 4) // 2
    xe = jnp.transpose(xm[:, 0::2, :], (1, 0, 2)).reshape(rows_half * n, (w + 4) * c)
    xo = jnp.transpose(xm[:, 1::2, :], (1, 0, 2)).reshape(rows_half * n, (w + 4) * c)

    kernel = functools.partial(_simplenet_kernel, n=n, h=h, w=w, c1=c1)
    zpad_shape = ((h // 2 + 4) * n, (w // 2 + 4) * c1)

    args = (xe, xo, p["w1m"], p["b1t"], p["w2m"], p["b2t"], p["bn2_m"],
            p["bn2_mt"], p["gb2"], p["fc1_w"], p["fc1_b"], p["gb1"],
            p["fc2_w"], p["fc2_b"])
    out = pl.pallas_call(
        kernel,
        out_shape=jax.ShapeDtypeStruct((n, 1), jnp.float32),
        grid=(1,),
        in_specs=[_full_spec(a.shape) for a in args],
        out_specs=_full_spec((n, 1)),
        scratch_shapes=[pltpu.VMEM(zpad_shape, jnp.float32)],
        compiler_params=pltpu.CompilerParams(dimension_semantics=("arbitrary",)),
    )(*args)
    return jnp.squeeze(out, axis=-1)


# --------------------------------------------------------------------------- #
# Parameters (PyTorch layout) and one-time kernel-ready preparation            #
# --------------------------------------------------------------------------- #
def init_params(key, c_in, c1, c2, fc_nodes, height, width):
    d = (width // 4) * (height // 4) * c2
    ks = jax.random.split(key, 8)
    return {
        "conv1_w": 0.1 * jax.random.normal(ks[0], (c1, c_in, 5, 5), jnp.float32),
        "conv1_b": 0.1 * jax.random.normal(ks[1], (c1,), jnp.float32),
        "conv2_w": 0.1 * jax.random.normal(ks[2], (c2, c1, 5, 5), jnp.float32),
        "conv2_b": 0.1 * jax.random.normal(ks[3], (c2,), jnp.float32),
        "bn2_gamma": jnp.ones((c2,), jnp.float32),
        "bn2_beta": jnp.zeros((c2,), jnp.float32),
        "fc1_w": 0.1 * jax.random.normal(ks[4], (fc_nodes, d), jnp.float32),  # (out, in)
        "fc1_b": 0.1 * jax.random.normal(ks[5], (fc_nodes,), jnp.float32),
        "bn1_gamma": jnp.ones((fc_nodes,), jnp.float32),
        "bn1_beta": jnp.zeros((fc_nodes,), jnp.float32),
        "fc2_w": 0.1 * jax.random.normal(ks[6], (1, fc_nodes), jnp.float32),  # (out, in)
        "fc2_b": 0.1 * jax.random.normal(ks[7], (1,), jnp.float32),
    }


def _banded_conv_weights(w_oihw, width_in):
    """Banded (Toeplitz-along-W) weights for a 5x5 / stride-1 / pad-2 conv in the
    merged (w, c_in) lane layout.  The even and odd output-column banks are
    concatenated along the output-lane axis so each dy tap is a single lane-dense
    matmul and the 2x2 pool can be fused as a lane-half max."""
    wnp = np.asarray(w_oihw, np.float32)               # (Cout, Cin, 5, 5)
    c_out, c_in, kh, kw = wnp.shape
    wo = width_in // 2
    band = np.zeros((kh, (width_in + 4) * c_in, 2 * wo * c_out), np.float32)
    for dy in range(kh):
        for dx in range(kw):
            tap = wnp[:, :, dy, dx].T                  # (Cin, Cout)
            for wq in range(wo):
                # even output column 2*wq -> lanes [wq*Cout : (wq+1)*Cout]
                band[dy, (2 * wq + dx) * c_in:(2 * wq + dx + 1) * c_in,
                     wq * c_out:(wq + 1) * c_out] = tap
                # odd output column 2*wq+1 -> lanes [(wo+wq)*Cout : (wo+wq+1)*Cout]
                band[dy, (2 * wq + 1 + dx) * c_in:(2 * wq + 2 + dx) * c_in,
                     (wo + wq) * c_out:(wo + wq + 1) * c_out] = tap
    return jnp.asarray(band, jnp.bfloat16)


def prepare_params(params, height, width):
    assert height % 4 == 0 and width % 4 == 0
    c2 = params["conv2_w"].shape[0]
    fcn = params["fc1_w"].shape[0]
    h4, w4 = height // 4, width // 4
    lanes2 = 2 * w4 * c2

    # fc1 weight: PyTorch flattens (c, h, w); the kernel's pooled features come in
    # per-pooled-row blocks of (w4, c2) lanes -> permute the weight rows once here
    # so the flatten can be folded into fc1 as a sum of small dots.
    fc1 = np.asarray(params["fc1_w"], np.float32).T.reshape(c2, h4, w4, fcn)
    fc1 = np.transpose(fc1, (1, 2, 0, 3)).reshape(h4 * w4 * c2, fcn)

    # 0/1 matrix mapping conv2-output lanes -> channels (lane % c2 == channel);
    # used to reduce per-lane BN stats to per-channel and to broadcast them back.
    m = (np.arange(lanes2)[:, None] % c2 == np.arange(c2)[None, :]).astype(np.float32)

    return {
        "w1m": _banded_conv_weights(params["conv1_w"], width),
        "b1t": jnp.asarray(np.tile(np.asarray(params["conv1_b"], np.float32),
                                   width // 2)[None, :]),
        "w2m": _banded_conv_weights(params["conv2_w"], width // 2),
        "b2t": jnp.asarray(np.tile(np.asarray(params["conv2_b"], np.float32),
                                   2 * w4)[None, :]),
        "bn2_m": jnp.asarray(m),
        "bn2_mt": jnp.asarray(m.T),
        "gb2": jnp.stack([jnp.asarray(params["bn2_gamma"], jnp.float32),
                          jnp.asarray(params["bn2_beta"], jnp.float32)]),
        "fc1_w": jnp.asarray(fc1, jnp.float32),
        "fc1_b": jnp.asarray(np.asarray(params["fc1_b"], np.float32)[None, :]),
        "gb1": jnp.stack([jnp.asarray(params["bn1_gamma"], jnp.float32),
                          jnp.asarray(params["bn1_beta"], jnp.float32)]),
        "fc2_w": jnp.asarray(np.asarray(params["fc2_w"], np.float32)),          # (1, FC)
        "fc2_b": jnp.asarray(np.asarray(params["fc2_b"], np.float32)[None, :]),  # (1, 1)
    }


if __name__ == "__main__":
    # SimpleNet(width=16, height=16, color_channels=4, conv1_out=8, conv2_out=8, fc_nodes=32)
    N, C, H, W = 2, 4, 16, 16
    C1, C2, FC = 8, 8, 32

    key = jax.random.PRNGKey(0)
    pkey, xkey = jax.random.split(key)
    raw_params = init_params(pkey, C, C1, C2, FC, H, W)
    prep = prepare_params(raw_params, H, W)
    x = jax.random.normal(xkey, (N, C, H, W), jnp.float32)

    out = jax.jit(simple_net_forward)(x, prep)
    out = jax.block_until_ready(out)
    assert out.shape == (N,), out.shape
    assert bool(jnp.all((out >= 0.0) & (out <= 1.0)))
    print("KERNEL_OK")
</pallas_src>

<mosaic_0001>
module attributes {stable_mosaic.version = 11 : i64} {
  func.func @_simplenet_kernel(%arg0: i32, %arg1: memref<20x80xf32, #tpu.memory_space<vmem>>, %arg2: memref<20x80xf32, #tpu.memory_space<vmem>>, %arg3: memref<5x80x128xbf16, #tpu.memory_space<vmem>>, %arg4: memref<1x64xf32, #tpu.memory_space<vmem>>, %arg5: memref<5x96x64xbf16, #tpu.memory_space<vmem>>, %arg6: memref<1x64xf32, #tpu.memory_space<vmem>>, %arg7: memref<64x8xf32, #tpu.memory_space<vmem>>, %arg8: memref<8x64xf32, #tpu.memory_space<vmem>>, %arg9: memref<2x8xf32, #tpu.memory_space<vmem>>, %arg10: memref<128x32xf32, #tpu.memory_space<vmem>>, %arg11: memref<1x32xf32, #tpu.memory_space<vmem>>, %arg12: memref<2x32xf32, #tpu.memory_space<vmem>>, %arg13: memref<1x32xf32, #tpu.memory_space<vmem>>, %arg14: memref<1x1xf32, #tpu.memory_space<vmem>>, %arg15: memref<2x1xf32, #tpu.memory_space<vmem>>, %arg16: memref<24x96xf32, #tpu.memory_space<vmem>>) attributes {dimension_semantics = [#tpu.dimension_semantics<arbitrary>], iteration_bounds = array<i64: 1>, scalar_prefetch = 0 : i64, scratch_operands = 1 : i64, tpu.core_type = #tpu.core_type<tc>, window_params = [{pipeline_mode = #tpu.pipeline_mode<synchronous>, transform_indices = @transform_0, window_bounds = array<i64: 20, 80>}, {pipeline_mode = #tpu.pipeline_mode<synchronous>, transform_indices = @transform_1, window_bounds = array<i64: 20, 80>}, {pipeline_mode = #tpu.pipeline_mode<synchronous>, transform_indices = @transform_2, window_bounds = array<i64: 5, 80, 128>}, {pipeline_mode = #tpu.pipeline_mode<synchronous>, transform_indices = @transform_3, window_bounds = array<i64: 1, 64>}, {pipeline_mode = #tpu.pipeline_mode<synchronous>, transform_indices = @transform_4, window_bounds = array<i64: 5, 96, 64>}, {pipeline_mode = #tpu.pipeline_mode<synchronous>, transform_indices = @transform_5, window_bounds = array<i64: 1, 64>}, {pipeline_mode = #tpu.pipeline_mode<synchronous>, transform_indices = @transform_6, window_bounds = array<i64: 64, 8>}, {pipeline_mode = #tpu.pipeline_mode<synchronous>, transform_indices = @transform_7, window_bounds = array<i64: 8, 64>}, {pipeline_mode = #tpu.pipeline_mode<synchronous>, transform_indices = @transform_8, window_bounds = array<i64: 2, 8>}, {pipeline_mode = #tpu.pipeline_mode<synchronous>, transform_indices = @transform_9, window_bounds = array<i64: 128, 32>}, {pipeline_mode = #tpu.pipeline_mode<synchronous>, transform_indices = @transform_10, window_bounds = array<i64: 1, 32>}, {pipeline_mode = #tpu.pipeline_mode<synchronous>, transform_indices = @transform_11, window_bounds = array<i64: 2, 32>}, {pipeline_mode = #tpu.pipeline_mode<synchronous>, transform_indices = @transform_12, window_bounds = array<i64: 1, 32>}, {pipeline_mode = #tpu.pipeline_mode<synchronous>, transform_indices = @transform_13, window_bounds = array<i64: 1, 1>}, {pipeline_mode = #tpu.pipeline_mode<synchronous>, transform_indices = @transform_14, window_bounds = array<i64: 2, 1>}]} {
    %c0 = arith.constant 0 : index
    %c0_0 = arith.constant 0 : index
    %0 = vector.load %arg1[%c0, %c0_0] : memref<20x80xf32, #tpu.memory_space<vmem>>, vector<16x80xf32>
    %1 = arith.truncf %0 : vector<16x80xf32> to vector<16x80xbf16>
    %c0_1 = arith.constant 0 : index
    %c0_2 = arith.constant 0 : index
    %c0_3 = arith.constant 0 : index
    %2 = vector.load %arg3[%c0_1, %c0_2, %c0_3] : memref<5x80x128xbf16, #tpu.memory_space<vmem>>, vector<1x80x128xbf16>
    %3 = vector.shape_cast %2 : vector<1x80x128xbf16> to vector<80x128xbf16>
    %cst = arith.constant dense<0.000000e+00> : vector<16x128xf32>
    %4 = tpu.matmul %1, %3, %cst {dimension_numbers = #tpu.dot_dimension_numbers<[1], [0], [0], [1], [0, 0, 1, 1], [], []>} : vector<16x80xbf16>, vector<80x128xbf16>, vector<16x128xf32> -> vector<16x128xf32>
    %c0_4 = arith.constant 0 : index
    %c0_5 = arith.constant 0 : index
    %5 = vector.load %arg2[%c0_4, %c0_5] : memref<20x80xf32, #tpu.memory_space<vmem>>, vector<16x80xf32>
    %6 = arith.truncf %5 : vector<16x80xf32> to vector<16x80xbf16>
    %c1 = arith.constant 1 : index
    %c0_6 = arith.constant 0 : index
    %c0_7 = arith.constant 0 : index
    %7 = vector.load %arg3[%c1, %c0_6, %c0_7] : memref<5x80x128xbf16, #tpu.memory_space<vmem>>, vector<1x80x128xbf16>
    %8 = vector.shape_cast %7 : vector<1x80x128xbf16> to vector<80x128xbf16>
    %cst_8 = arith.constant dense<0.000000e+00> : vector<16x128xf32>
    %9 = tpu.matmul %6, %8, %cst_8 {dimension_numbers = #tpu.dot_dimension_numbers<[1], [0], [0], [1], [0, 0, 1, 1], [], []>} : vector<16x80xbf16>, vector<80x128xbf16>, vector<16x128xf32> -> vector<16x128xf32>
    %10 = arith.addf %4, %9 : vector<16x128xf32>
    %c2 = arith.constant 2 : index
    %c0_9 = arith.constant 0 : index
    %11 = vector.load %arg1[%c2, %c0_9] : memref<20x80xf32, #tpu.memory_space<vmem>>, vector<16x80xf32>
    %12 = arith.truncf %11 : vector<16x80xf32> to vector<16x80xbf16>
    %c2_10 = arith.constant 2 : index
    %c0_11 = arith.constant 0 : index
    %c0_12 = arith.constant 0 : index
    %13 = vector.load %arg3[%c2_10, %c0_11, %c0_12] : memref<5x80x128xbf16, #tpu.memory_space<vmem>>, vector<1x80x128xbf16>
    %14 = vector.shape_cast %13 : vector<1x80x128xbf16> to vector<80x128xbf16>
    %cst_13 = arith.constant dense<0.000000e+00> : vector<16x128xf32>
    %15 = tpu.matmul %12, %14, %cst_13 {dimension_numbers = #tpu.dot_dimension_numbers<[1], [0], [0], [1], [0, 0, 1, 1], [], []>} : vector<16x80xbf16>, vector<80x128xbf16>, vector<16x128xf32> -> vector<16x128xf32>
    %16 = arith.addf %10, %15 : vector<16x128xf32>
    %c2_14 = arith.constant 2 : index
    %c0_15 = arith.constant 0 : index
    %17 = vector.load %arg2[%c2_14, %c0_15] : memref<20x80xf32, #tpu.memory_space<vmem>>, vector<16x80xf32>
    %18 = arith.truncf %17 : vector<16x80xf32> to vector<16x80xbf16>
    %c3 = arith.constant 3 : index
    %c0_16 = arith.constant 0 : index
    %c0_17 = arith.constant 0 : index
    %19 = vector.load %arg3[%c3, %c0_16, %c0_17] : memref<5x80x128xbf16, #tpu.memory_space<vmem>>, vector<1x80x128xbf16>
    %20 = vector.shape_cast %19 : vector<1x80x128xbf16> to vector<80x128xbf16>
    %cst_18 = arith.constant dense<0.000000e+00> : vector<16x128xf32>
    %21 = tpu.matmul %18, %20, %cst_18 {dimension_numbers = #tpu.dot_dimension_numbers<[1], [0], [0], [1], [0, 0, 1, 1], [], []>} : vector<16x80xbf16>, vector<80x128xbf16>, vector<16x128xf32> -> vector<16x128xf32>
    %22 = arith.addf %16, %21 : vector<16x128xf32>
    %c4 = arith.constant 4 : index
    %c0_19 = arith.constant 0 : index
    %23 = vector.load %arg1[%c4, %c0_19] : memref<20x80xf32, #tpu.memory_space<vmem>>, vector<16x80xf32>
    %24 = arith.truncf %23 : vector<16x80xf32> to vector<16x80xbf16>
    %c4_20 = arith.constant 4 : index
    %c0_21 = arith.constant 0 : index
    %c0_22 = arith.constant 0 : index
    %25 = vector.load %arg3[%c4_20, %c0_21, %c0_22] : memref<5x80x128xbf16, #tpu.memory_space<vmem>>, vector<1x80x128xbf16>
    %26 = vector.shape_cast %25 : vector<1x80x128xbf16> to vector<80x128xbf16>
    %cst_23 = arith.constant dense<0.000000e+00> : vector<16x128xf32>
    %27 = tpu.matmul %24, %26, %cst_23 {dimension_numbers = #tpu.dot_dimension_numbers<[1], [0], [0], [1], [0, 0, 1, 1], [], []>} : vector<16x80xbf16>, vector<80x128xbf16>, vector<16x128xf32> -> vector<16x128xf32>
    %28 = arith.addf %22, %27 : vector<16x128xf32>
    %c0_24 = arith.constant 0 : index
    %c0_25 = arith.constant 0 : index
    %29 = vector.load %arg2[%c0_24, %c0_25] : memref<20x80xf32, #tpu.memory_space<vmem>>, vector<16x80xf32>
    %30 = arith.truncf %29 : vector<16x80xf32> to vector<16x80xbf16>
    %c0_26 = arith.constant 0 : index
    %c0_27 = arith.constant 0 : index
    %c0_28 = arith.constant 0 : index
    %31 = vector.load %arg3[%c0_26, %c0_27, %c0_28] : memref<5x80x128xbf16, #tpu.memory_space<vmem>>, vector<1x80x128xbf16>
    %32 = vector.shape_cast %31 : vector<1x80x128xbf16> to vector<80x128xbf16>
    %cst_29 = arith.constant dense<0.000000e+00> : vector<16x128xf32>
    %33 = tpu.matmul %30, %32, %cst_29 {dimension_numbers = #tpu.dot_dimension_numbers<[1], [0], [0], [1], [0, 0, 1, 1], [], []>} : vector<16x80xbf16>, vector<80x128xbf16>, vector<16x128xf32> -> vector<16x128xf32>
    %c2_30 = arith.constant 2 : index
    %c0_31 = arith.constant 0 : index
    %34 = vector.load %arg1[%c2_30, %c0_31] : memref<20x80xf32, #tpu.memory_space<vmem>>, vector<16x80xf32>
    %35 = arith.truncf %34 : vector<16x80xf32> to vector<16x80xbf16>
    %c1_32 = arith.constant 1 : index
    %c0_33 = arith.constant 0 : index
    %c0_34 = arith.constant 0 : index
    %36 = vector.load %arg3[%c1_32, %c0_33, %c0_34] : memref<5x80x128xbf16, #tpu.memory_space<vmem>>, vector<1x80x128xbf16>
    %37 = vector.shape_cast %36 : vector<1x80x128xbf16> to vector<80x128xbf16>
    %cst_35 = arith.constant dense<0.000000e+00> : vector<16x128xf32>
    %38 = tpu.matmul %35, %37, %cst_35 {dimension_numbers = #tpu.dot_dimension_numbers<[1], [0], [0], [1], [0, 0, 1, 1], [], []>} : vector<16x80xbf16>, vector<80x128xbf16>, vector<16x128xf32> -> vector<16x128xf32>
    %39 = arith.addf %33, %38 : vector<16x128xf32>
    %c2_36 = arith.constant 2 : index
    %c0_37 = arith.constant 0 : index
    %40 = vector.load %arg2[%c2_36, %c0_37] : memref<20x80xf32, #tpu.memory_space<vmem>>, vector<16x80xf32>
    %41 = arith.truncf %40 : vector<16x80xf32> to vector<16x80xbf16>
    %c2_38 = arith.constant 2 : index
    %c0_39 = arith.constant 0 : index
    %c0_40 = arith.constant 0 : index
    %42 = vector.load %arg3[%c2_38, %c0_39, %c0_40] : memref<5x80x128xbf16, #tpu.memory_space<vmem>>, vector<1x80x128xbf16>
    %43 = vector.shape_cast %42 : vector<1x80x128xbf16> to vector<80x128xbf16>
    %cst_41 = arith.constant dense<0.000000e+00> : vector<16x128xf32>
    %44 = tpu.matmul %41, %43, %cst_41 {dimension_numbers = #tpu.dot_dimension_numbers<[1], [0], [0], [1], [0, 0, 1, 1], [], []>} : vector<16x80xbf16>, vector<80x128xbf16>, vector<16x128xf32> -> vector<16x128xf32>
    %45 = arith.addf %39, %44 : vector<16x128xf32>
    %c4_42 = arith.constant 4 : index
    %c0_43 = arith.constant 0 : index
    %46 = vector.load %arg1[%c4_42, %c0_43] : memref<20x80xf32, #tpu.memory_space<vmem>>, vector<16x80xf32>
    %47 = arith.truncf %46 : vector<16x80xf32> to vector<16x80xbf16>
    %c3_44 = arith.constant 3 : index
    %c0_45 = arith.constant 0 : index
    %c0_46 = arith.constant 0 : index
    %48 = vector.load %arg3[%c3_44, %c0_45, %c0_46] : memref<5x80x128xbf16, #tpu.memory_space<vmem>>, vector<1x80x128xbf16>
    %49 = vector.shape_cast %48 : vector<1x80x128xbf16> to vector<80x128xbf16>
    %cst_47 = arith.constant dense<0.000000e+00> : vector<16x128xf32>
    %50 = tpu.matmul %47, %49, %cst_47 {dimension_numbers = #tpu.dot_dimension_numbers<[1], [0], [0], [1], [0, 0, 1, 1], [], []>} : vector<16x80xbf16>, vector<80x128xbf16>, vector<16x128xf32> -> vector<16x128xf32>
    %51 = arith.addf %45, %50 : vector<16x128xf32>
    %c4_48 = arith.constant 4 : index
    %c0_49 = arith.constant 0 : index
    %52 = vector.load %arg2[%c4_48, %c0_49] : memref<20x80xf32, #tpu.memory_space<vmem>>, vector<16x80xf32>
    %53 = arith.truncf %52 : vector<16x80xf32> to vector<16x80xbf16>
    %c4_50 = arith.constant 4 : index
    %c0_51 = arith.constant 0 : index
    %c0_52 = arith.constant 0 : index
    %54 = vector.load %arg3[%c4_50, %c0_51, %c0_52] : memref<5x80x128xbf16, #tpu.memory_space<vmem>>, vector<1x80x128xbf16>
    %55 = vector.shape_cast %54 : vector<1x80x128xbf16> to vector<80x128xbf16>
    %cst_53 = arith.constant dense<0.000000e+00> : vector<16x128xf32>
    %56 = tpu.matmul %53, %55, %cst_53 {dimension_numbers = #tpu.dot_dimension_numbers<[1], [0], [0], [1], [0, 0, 1, 1], [], []>} : vector<16x80xbf16>, vector<80x128xbf16>, vector<16x128xf32> -> vector<16x128xf32>
    %57 = arith.addf %51, %56 : vector<16x128xf32>
    %58 = vector.extract_strided_slice %28 {offsets = [0, 0], sizes = [16, 64], strides = [1, 1]} : vector<16x128xf32> to vector<16x64xf32>
    %59 = vector.extract_strided_slice %28 {offsets = [0, 64], sizes = [16, 64], strides = [1, 1]} : vector<16x128xf32> to vector<16x64xf32>
    %60 = arith.maximumf %58, %59 : vector<16x64xf32>
    %61 = vector.extract_strided_slice %57 {offsets = [0, 0], sizes = [16, 64], strides = [1, 1]} : vector<16x128xf32> to vector<16x64xf32>
    %62 = vector.extract_strided_slice %57 {offsets = [0, 64], sizes = [16, 64], strides = [1, 1]} : vector<16x128xf32> to vector<16x64xf32>
    %63 = arith.maximumf %61, %62 : vector<16x64xf32>
    %64 = arith.maximumf %60, %63 : vector<16x64xf32>
    %c0_54 = arith.constant 0 : index
    %c0_55 = arith.constant 0 : index
    %65 = vector.load %arg4[%c0_54, %c0_55] : memref<1x64xf32, #tpu.memory_space<vmem>>, vector<1x64xf32>
    %66 = vector.broadcast %65 : vector<1x64xf32> to vector<16x64xf32>
    %67 = arith.addf %64, %66 : vector<16x64xf32>
    %cst_56 = arith.constant 0.000000e+00 : f32
    %68 = vector.broadcast %cst_56 : f32 to vector<16x64xf32>
    %69 = arith.maximumf %67, %68 : vector<16x64xf32>
    %cst_57 = arith.constant 0.000000e+00 : f32
    %70 = vector.broadcast %cst_57 : f32 to vector<24x96xf32>
    %c0_58 = arith.constant 0 : index
    %c0_59 = arith.constant 0 : index
    %71 = vector.load %arg16[%c0_58, %c0_59] : memref<24x96xf32, #tpu.memory_space<vmem>>, vector<24x96xf32>
    tpu.vector_store %arg16[%c0_58, %c0_59], %70 {strides = array<i32>} : memref<24x96xf32, #tpu.memory_space<vmem>>, vector<24x96xf32>,
    %c4_60 = arith.constant 4 : index
    %c16 = arith.constant 16 : index
    %72 = vector.load %arg16[%c4_60, %c16] : memref<24x96xf32, #tpu.memory_space<vmem>>, vector<16x64xf32>
    tpu.vector_store %arg16[%c4_60, %c16], %69 {strides = array<i32>} : memref<24x96xf32, #tpu.memory_space<vmem>>, vector<16x64xf32>,
    %c0_61 = arith.constant 0 : index
    %c0_62 = arith.constant 0 : index
    %73 = vector.load %arg16[%c0_61, %c0_62] : memref<24x96xf32, #tpu.memory_space<vmem>>, vector<16x96xf32>
    %74 = arith.truncf %73 : vector<16x96xf32> to vector<16x96xbf16>
    %c0_63 = arith.constant 0 : index
    %c0_64 = arith.constant 0 : index
    %c0_65 = arith.constant 0 : index
    %75 = vector.load %arg5[%c0_63, %c0_64, %c0_65] : memref<5x96x64xbf16, #tpu.memory_space<vmem>>, vector<1x96x64xbf16>
    %76 = vector.shape_cast %75 : vector<1x96x64xbf16> to vector<96x64xbf16>
    %cst_66 = arith.constant dense<0.000000e+00> : vector<16x64xf32>
    %77 = tpu.matmul %74, %76, %cst_66 {dimension_numbers = #tpu.dot_dimension_numbers<[1], [0], [0], [1], [0, 0, 1, 1], [], []>} : vector<16x96xbf16>, vector<96x64xbf16>, vector<16x64xf32> -> vector<16x64xf32>
    %c2_67 = arith.constant 2 : index
    %c0_68 = arith.constant 0 : index
    %78 = vector.load %arg16[%c2_67, %c0_68] : memref<24x96xf32, #tpu.memory_space<vmem>>, vector<16x96xf32>
    %79 = arith.truncf %78 : vector<16x96xf32> to vector<16x96xbf16>
    %c1_69 = arith.constant 1 : index
    %c0_70 = arith.constant 0 : index
    %c0_71 = arith.constant 0 : index
    %80 = vector.load %arg5[%c1_69, %c0_70, %c0_71] : memref<5x96x64xbf16, #tpu.memory_space<vmem>>, vector<1x96x64xbf16>
    %81 = vector.shape_cast %80 : vector<1x96x64xbf16> to vector<96x64xbf16>
    %cst_72 = arith.constant dense<0.000000e+00> : vector<16x64xf32>
    %82 = tpu.matmul %79, %81, %cst_72 {dimension_numbers = #tpu.dot_dimension_numbers<[1], [0], [0], [1], [0, 0, 1, 1], [], []>} : vector<16x96xbf16>, vector<96x64xbf16>, vector<16x64xf32> -> vector<16x64xf32>
    %83 = arith.addf %77, %82 : vector<16x64xf32>
    %c4_73 = arith.constant 4 : index
    %c0_74 = arith.constant 0 : index
    %84 = vector.load %arg16[%c4_73, %c0_74] : memref<24x96xf32, #tpu.memory_space<vmem>>, vector<16x96xf32>
    %85 = arith.truncf %84 : vector<16x96xf32> to vector<16x96xbf16>
    %c2_75 = arith.constant 2 : index
    %c0_76 = arith.constant 0 : index
    %c0_77 = arith.constant 0 : index
    %86 = vector.load %arg5[%c2_75, %c0_76, %c0_77] : memref<5x96x64xbf16, #tpu.memory_space<vmem>>, vector<1x96x64xbf16>
    %87 = vector.shape_cast %86 : vector<1x96x64xbf16> to vector<96x64xbf16>
    %cst_78 = arith.constant dense<0.000000e+00> : vector<16x64xf32>
    %88 = tpu.matmul %85, %87, %cst_78 {dimension_numbers = #tpu.dot_dimension_numbers<[1], [0], [0], [1], [0, 0, 1, 1], [], []>} : vector<16x96xbf16>, vector<96x64xbf16>, vector<16x64xf32> -> vector<16x64xf32>
    %89 = arith.addf %83, %88 : vector<16x64xf32>
    %c6 = arith.constant 6 : index
    %c0_79 = arith.constant 0 : index
    %90 = vector.load %arg16[%c6, %c0_79] : memref<24x96xf32, #tpu.memory_space<vmem>>, vector<16x96xf32>
    %91 = arith.truncf %90 : vector<16x96xf32> to vector<16x96xbf16>
    %c3_80 = arith.constant 3 : index
    %c0_81 = arith.constant 0 : index
    %c0_82 = arith.constant 0 : index
    %92 = vector.load %arg5[%c3_80, %c0_81, %c0_82] : memref<5x96x64xbf16, #tpu.memory_space<vmem>>, vector<1x96x64xbf16>
    %93 = vector.shape_cast %92 : vector<1x96x64xbf16> to vector<96x64xbf16>
    %cst_83 = arith.constant dense<0.000000e+00> : vector<16x64xf32>
    %94 = tpu.matmul %91, %93, %cst_83 {dimension_numbers = #tpu.dot_dimension_numbers<[1], [0], [0], [1], [0, 0, 1, 1], [], []>} : vector<16x96xbf16>, vector<96x64xbf16>, vector<16x64xf32> -> vector<16x64xf32>
    %95 = arith.addf %89, %94 : vector<16x64xf32>
    %c8 = arith.constant 8 : index
    %c0_84 = arith.constant 0 : index
    %96 = vector.load %arg16[%c8, %c0_84] : memref<24x96xf32, #tpu.memory_space<vmem>>, vector<16x96xf32>
    %97 = arith.truncf %96 : vector<16x96xf32> to vector<16x96xbf16>
    %c4_85 = arith.constant 4 : index
    %c0_86 = arith.constant 0 : index
    %c0_87 = arith.constant 0 : index
    %98 = vector.load %arg5[%c4_85, %c0_86, %c0_87] : memref<5x96x64xbf16, #tpu.memory_space<vmem>>, vector<1x96x64xbf16>
    %99 = vector.shape_cast %98 : vector<1x96x64xbf16> to vector<96x64xbf16>
    %cst_88 = arith.constant dense<0.000000e+00> : vector<16x64xf32>
    %100 = tpu.matmul %97, %99, %cst_88 {dimension_numbers = #tpu.dot_dimension_numbers<[1], [0], [0], [1], [0, 0, 1, 1], [], []>} : vector<16x96xbf16>, vector<96x64xbf16>, vector<16x64xf32> -> vector<16x64xf32>
    %101 = arith.addf %95, %100 : vector<16x64xf32>
    %c0_89 = arith.constant 0 : index
    %c0_90 = arith.constant 0 : index
    %102 = vector.load %arg6[%c0_89, %c0_90] : memref<1x64xf32, #tpu.memory_space<vmem>>, vector<1x64xf32>
    %103 = vector.broadcast %102 : vector<1x64xf32> to vector<16x64xf32>
    %104 = arith.addf %101, %103 : vector<16x64xf32>
    %cst_91 = arith.constant dense<0.000000e+00> : vector<64xf32>
    %105 = vector.multi_reduction <add>, %104, %cst_91 [0] : vector<16x64xf32> to vector<64xf32>
    %106 = vector.shape_cast %105 : vector<64xf32> to vector<1x64xf32>
    %107 = arith.mulf %104, %104 : vector<16x64xf32>
    %cst_92 = arith.constant dense<0.000000e+00> : vector<64xf32>
    %108 = vector.multi_reduction <add>, %107, %cst_92 [0] : vector<16x64xf32> to vector<64xf32>
    %109 = vector.shape_cast %108 : vector<64xf32> to vector<1x64xf32>
    %c0_93 = arith.constant 0 : index
    %c0_94 = arith.constant 0 : index
    %110 = vector.load %arg7[%c0_93, %c0_94] : memref<64x8xf32, #tpu.memory_space<vmem>>, vector<64x8xf32>
    %cst_95 = arith.constant dense<0.000000e+00> : vector<1x8xf32>
    %111 = tpu.matmul %106, %110, %cst_95 {dimension_numbers = #tpu.dot_dimension_numbers<[1], [0], [0], [1], [0, 0, 1, 1], [], []>} : vector<1x64xf32>, vector<64x8xf32>, vector<1x8xf32> -> vector<1x8xf32>
    %c0_96 = arith.constant 0 : index
    %c0_97 = arith.constant 0 : index
    %112 = vector.load %arg7[%c0_96, %c0_97] : memref<64x8xf32, #tpu.memory_space<vmem>>, vector<64x8xf32>
    %cst_98 = arith.constant dense<0.000000e+00> : vector<1x8xf32>
    %113 = tpu.matmul %109, %112, %cst_98 {dimension_numbers = #tpu.dot_dimension_numbers<[1], [0], [0], [1], [0, 0, 1, 1], [], []>} : vector<1x64xf32>, vector<64x8xf32>, vector<1x8xf32> -> vector<1x8xf32>
    %cst_99 = arith.constant 1.280000e+02 : f32
    %114 = vector.broadcast %cst_99 : f32 to vector<1x8xf32>
    %115 = arith.divf %111, %114 : vector<1x8xf32>
    %cst_100 = arith.constant 1.280000e+02 : f32
    %116 = vector.broadcast %cst_100 : f32 to vector<1x8xf32>
    %117 = arith.divf %113, %116 : vector<1x8xf32>
    %118 = arith.mulf %115, %115 : vector<1x8xf32>
    %119 = arith.subf %117, %118 : vector<1x8xf32>
    %cst_101 = arith.constant 0.000000e+00 : f32
    %120 = vector.broadcast %cst_101 : f32 to vector<1x8xf32>
    %121 = arith.maximumf %119, %120 : vector<1x8xf32>
    %c0_102 = arith.constant 0 : index
    %c0_103 = arith.constant 0 : index
    %122 = vector.load %arg9[%c0_102, %c0_103] : memref<2x8xf32, #tpu.memory_space<vmem>>, vector<1x8xf32>
    %cst_104 = arith.constant 9.99999974E-6 : f32
    %123 = vector.broadcast %cst_104 : f32 to vector<1x8xf32>
    %124 = arith.addf %121, %123 : vector<1x8xf32>
    %125 = math.rsqrt %124 : vector<1x8xf32>
    %126 = arith.mulf %122, %125 : vector<1x8xf32>
    %c1_105 = arith.constant 1 : index
    %c0_106 = arith.constant 0 : index
    %127 = vector.load %arg9[%c1_105, %c0_106] : memref<2x8xf32, #tpu.memory_space<vmem>>, vector<1x8xf32>
    %128 = arith.mulf %115, %126 : vector<1x8xf32>
    %129 = arith.subf %127, %128 : vector<1x8xf32>
    %c0_107 = arith.constant 0 : index
    %c0_108 = arith.constant 0 : index
    %130 = vector.load %arg8[%c0_107, %c0_108] : memref<8x64xf32, #tpu.memory_space<vmem>>, vector<8x64xf32>
    %cst_109 = arith.constant dense<0.000000e+00> : vector<1x64xf32>
    %131 = tpu.matmul %126, %130, %cst_109 {dimension_numbers = #tpu.dot_dimension_numbers<[1], [0], [0], [1], [0, 0, 1, 1], [], []>} : vector<1x8xf32>, vector<8x64xf32>, vector<1x64xf32> -> vector<1x64xf32>
    %c0_110 = arith.constant 0 : index
    %c0_111 = arith.constant 0 : index
    %132 = vector.load %arg8[%c0_110, %c0_111] : memref<8x64xf32, #tpu.memory_space<vmem>>, vector<8x64xf32>
    %cst_112 = arith.constant dense<0.000000e+00> : vector<1x64xf32>
    %133 = tpu.matmul %129, %132, %cst_112 {dimension_numbers = #tpu.dot_dimension_numbers<[1], [0], [0], [1], [0, 0, 1, 1], [], []>} : vector<1x8xf32>, vector<8x64xf32>, vector<1x64xf32> -> vector<1x64xf32>
    %134 = vector.broadcast %131 : vector<1x64xf32> to vector<16x64xf32>
    %135 = arith.mulf %104, %134 : vector<16x64xf32>
    %136 = vector.broadcast %133 : vector<1x64xf32> to vector<16x64xf32>
    %137 = arith.addf %135, %136 : vector<16x64xf32>
    %cst_113 = arith.constant 0.000000e+00 : f32
    %138 = vector.broadcast %cst_113 : f32 to vector<16x64xf32>
    %139 = arith.maximumf %137, %138 : vector<16x64xf32>
    %140 = vector.extract_strided_slice %139 {offsets = [0, 0], sizes = [2, 64], strides = [1, 1]} : vector<16x64xf32> to vector<2x64xf32>
    %141 = vector.extract_strided_slice %139 {offsets = [2, 0], sizes = [2, 64], strides = [1, 1]} : vector<16x64xf32> to vector<2x64xf32>
    %142 = vector.extract_strided_slice %140 {offsets = [0, 0], sizes = [2, 32], strides = [1, 1]} : vector<2x64xf32> to vector<2x32xf32>
    %143 = vector.extract_strided_slice %140 {offsets = [0, 32], sizes = [2, 32], strides = [1, 1]} : vector<2x64xf32> to vector<2x32xf32>
    %144 = arith.maximumf %142, %143 : vector<2x32xf32>
    %145 = vector.extract_strided_slice %141 {offsets = [0, 0], sizes = [2, 32], strides = [1, 1]} : vector<2x64xf32> to vector<2x32xf32>
    %146 = vector.extract_strided_slice %141 {offsets = [0, 32], sizes = [2, 32], strides = [1, 1]} : vector<2x64xf32> to vector<2x32xf32>
    %147 = arith.maximumf %145, %146 : vector<2x32xf32>
    %148 = arith.maximumf %144, %147 : vector<2x32xf32>
    %c0_114 = arith.constant 0 : index
    %c0_115 = arith.constant 0 : index
    %149 = vector.load %arg10[%c0_114, %c0_115] : memref<128x32xf32, #tpu.memory_space<vmem>>, vector<32x32xf32>
    %cst_116 = arith.constant dense<0.000000e+00> : vector<2x32xf32>
    %150 = tpu.matmul %148, %149, %cst_116 {dimension_numbers = #tpu.dot_dimension_numbers<[1], [0], [0], [1], [0, 0, 1, 1], [], []>} : vector<2x32xf32>, vector<32x32xf32>, vector<2x32xf32> -> vector<2x32xf32>
    %151 = vector.extract_strided_slice %139 {offsets = [4, 0], sizes = [2, 64], strides = [1, 1]} : vector<16x64xf32> to vector<2x64xf32>
    %152 = vector.extract_strided_slice %139 {offsets = [6, 0], sizes = [2, 64], strides = [1, 1]} : vector<16x64xf32> to vector<2x64xf32>
    %153 = vector.extract_strided_slice %151 {offsets = [0, 0], sizes = [2, 32], strides = [1, 1]} : vector<2x64xf32> to vector<2x32xf32>
    %154 = vector.extract_strided_slice %151 {offsets = [0, 32], sizes = [2, 32], strides = [1, 1]} : vector<2x64xf32> to vector<2x32xf32>
    %155 = arith.maximumf %153, %154 : vector<2x32xf32>
    %156 = vector.extract_strided_slice %152 {offsets = [0, 0], sizes = [2, 32], strides = [1, 1]} : vector<2x64xf32> to vector<2x32xf32>
    %157 = vector.extract_strided_slice %152 {offsets = [0, 32], sizes = [2, 32], strides = [1, 1]} : vector<2x64xf32> to vector<2x32xf32>
    %158 = arith.maximumf %156, %157 : vector<2x32xf32>
    %159 = arith.maximumf %155, %158 : vector<2x32xf32>
    %c32 = arith.constant 32 : index
    %c0_117 = arith.constant 0 : index
    %160 = vector.load %arg10[%c32, %c0_117] : memref<128x32xf32, #tpu.memory_space<vmem>>, vector<32x32xf32>
    %cst_118 = arith.constant dense<0.000000e+00> : vector<2x32xf32>
    %161 = tpu.matmul %159, %160, %cst_118 {dimension_numbers = #tpu.dot_dimension_numbers<[1], [0], [0], [1], [0, 0, 1, 1], [], []>} : vector<2x32xf32>, vector<32x32xf32>, vector<2x32xf32> -> vector<2x32xf32>
    %162 = arith.addf %150, %161 : vector<2x32xf32>
    %163 = vector.extract_strided_slice %139 {offsets = [8, 0], sizes = [2, 64], strides = [1, 1]} : vector<16x64xf32> to vector<2x64xf32>
    %164 = vector.extract_strided_slice %139 {offsets = [10, 0], sizes = [2, 64], strides = [1, 1]} : vector<16x64xf32> to vector<2x64xf32>
    %165 = vector.extract_strided_slice %163 {offsets = [0, 0], sizes = [2, 32], strides = [1, 1]} : vector<2x64xf32> to vector<2x32xf32>
    %166 = vector.extract_strided_slice %163 {offsets = [0, 32], sizes = [2, 32], strides = [1, 1]} : vector<2x64xf32> to vector<2x32xf32>
    %167 = arith.maximumf %165, %166 : vector<2x32xf32>
    %168 = vector.extract_strided_slice %164 {offsets = [0, 0], sizes = [2, 32], strides = [1, 1]} : vector<2x64xf32> to vector<2x32xf32>
    %169 = vector.extract_strided_slice %164 {offsets = [0, 32], sizes = [2, 32], strides = [1, 1]} : vector<2x64xf32> to vector<2x32xf32>
    %170 = arith.maximumf %168, %169 : vector<2x32xf32>
    %171 = arith.maximumf %167, %170 : vector<2x32xf32>
    %c64 = arith.constant 64 : index
    %c0_119 = arith.constant 0 : index
    %172 = vector.load %arg10[%c64, %c0_119] : memref<128x32xf32, #tpu.memory_space<vmem>>, vector<32x32xf32>
    %cst_120 = arith.constant dense<0.000000e+00> : vector<2x32xf32>
    %173 = tpu.matmul %171, %172, %cst_120 {dimension_numbers = #tpu.dot_dimension_numbers<[1], [0], [0], [1], [0, 0, 1, 1], [], []>} : vector<2x32xf32>, vector<32x32xf32>, vector<2x32xf32> -> vector<2x32xf32>
    %174 = arith.addf %162, %173 : vector<2x32xf32>
    %175 = vector.extract_strided_slice %139 {offsets = [12, 0], sizes = [2, 64], strides = [1, 1]} : vector<16x64xf32> to vector<2x64xf32>
    %176 = vector.extract_strided_slice %139 {offsets = [14, 0], sizes = [2, 64], strides = [1, 1]} : vector<16x64xf32> to vector<2x64xf32>
    %177 = vector.extract_strided_slice %175 {offsets = [0, 0], sizes = [2, 32], strides = [1, 1]} : vector<2x64xf32> to vector<2x32xf32>
    %178 = vector.extract_strided_slice %175 {offsets = [0, 32], sizes = [2, 32], strides = [1, 1]} : vector<2x64xf32> to vector<2x32xf32>
    %179 = arith.maximumf %177, %178 : vector<2x32xf32>
    %180 = vector.extract_strided_slice %176 {offsets = [0, 0], sizes = [2, 32], strides = [1, 1]} : vector<2x64xf32> to vector<2x32xf32>
    %181 = vector.extract_strided_slice %176 {offsets = [0, 32], sizes = [2, 32], strides = [1, 1]} : vector<2x64xf32> to vector<2x32xf32>
    %182 = arith.maximumf %180, %181 : vector<2x32xf32>
    %183 = arith.maximumf %179, %182 : vector<2x32xf32>
    %c96 = arith.constant 96 : index
    %c0_121 = arith.constant 0 : index
    %184 = vector.load %arg10[%c96, %c0_121] : memref<128x32xf32, #tpu.memory_space<vmem>>, vector<32x32xf32>
    %cst_122 = arith.constant dense<0.000000e+00> : vector<2x32xf32>
    %185 = tpu.matmul %183, %184, %cst_122 {dimension_numbers = #tpu.dot_dimension_numbers<[1], [0], [0], [1], [0, 0, 1, 1], [], []>} : vector<2x32xf32>, vector<32x32xf32>, vector<2x32xf32> -> vector<2x32xf32>
    %186 = arith.addf %174, %185 : vector<2x32xf32>
    %c0_123 = arith.constant 0 : index
    %c0_124 = arith.constant 0 : index
    %187 = vector.load %arg11[%c0_123, %c0_124] : memref<1x32xf32, #tpu.memory_space<vmem>>, vector<1x32xf32>
    %188 = vector.broadcast %187 : vector<1x32xf32> to vector<2x32xf32>
    %189 = arith.addf %186, %188 : vector<2x32xf32>
    %cst_125 = arith.constant dense<0.000000e+00> : vector<32xf32>
    %190 = vector.multi_reduction <add>, %189, %cst_125 [0] : vector<2x32xf32> to vector<32xf32>
    %191 = vector.shape_cast %190 : vector<32xf32> to vector<1x32xf32>
    %cst_126 = arith.constant 2.000000e+00 : f32
    %192 = vector.broadcast %cst_126 : f32 to vector<1x32xf32>
    %193 = arith.divf %191, %192 : vector<1x32xf32>
    %194 = vector.broadcast %193 : vector<1x32xf32> to vector<2x32xf32>
    %195 = arith.subf %189, %194 : vector<2x32xf32>
    %196 = vector.broadcast %193 : vector<1x32xf32> to vector<2x32xf32>
    %197 = arith.subf %189, %196 : vector<2x32xf32>
    %198 = arith.mulf %195, %197 : vector<2x32xf32>
    %cst_127 = arith.constant dense<0.000000e+00> : vector<32xf32>
    %199 = vector.multi_reduction <add>, %198, %cst_127 [0] : vector<2x32xf32> to vector<32xf32>
    %200 = vector.shape_cast %199 : vector<32xf32> to vector<1x32xf32>
    %cst_128 = arith.constant 2.000000e+00 : f32
    %201 = vector.broadcast %cst_128 : f32 to vector<1x32xf32>
    %202 = arith.divf %200, %201 : vector<1x32xf32>
    %203 = vector.broadcast %193 : vector<1x32xf32> to vector<2x32xf32>
    %204 = arith.subf %189, %203 : vector<2x32xf32>
    %cst_129 = arith.constant 9.99999974E-6 : f32
    %205 = vector.broadcast %cst_129 : f32 to vector<1x32xf32>
    %206 = arith.addf %202, %205 : vector<1x32xf32>
    %207 = math.rsqrt %206 : vector<1x32xf32>
    %208 = vector.broadcast %207 : vector<1x32xf32> to vector<2x32xf32>
    %209 = arith.mulf %204, %208 : vector<2x32xf32>
    %c0_130 = arith.constant 0 : index
    %c0_131 = arith.constant 0 : index
    %210 = vector.load %arg12[%c0_130, %c0_131] : memref<2x32xf32, #tpu.memory_space<vmem>>, vector<1x32xf32>
    %211 = vector.broadcast %210 : vector<1x32xf32> to vector<2x32xf32>
    %212 = arith.mulf %209, %211 : vector<2x32xf32>
    %c1_132 = arith.constant 1 : index
    %c0_133 = arith.constant 0 : index
    %213 = vector.load %arg12[%c1_132, %c0_133] : memref<2x32xf32, #tpu.memory_space<vmem>>, vector<1x32xf32>
    %214 = vector.broadcast %213 : vector<1x32xf32> to vector<2x32xf32>
    %215 = arith.addf %212, %214 : vector<2x32xf32>
    %cst_134 = arith.constant 0.000000e+00 : f32
    %216 = vector.broadcast %cst_134 : f32 to vector<2x32xf32>
    %217 = arith.maximumf %215, %216 : vector<2x32xf32>
    %c0_135 = arith.constant 0 : index
    %c0_136 = arith.constant 0 : index
    %218 = vector.load %arg13[%c0_135, %c0_136] : memref<1x32xf32, #tpu.memory_space<vmem>>, vector<1x32xf32>
    %219 = vector.broadcast %218 : vector<1x32xf32> to vector<2x32xf32>
    %220 = arith.mulf %217, %219 : vector<2x32xf32>
    %cst_137 = arith.constant dense<0.000000e+00> : vector<2xf32>
    %221 = vector.multi_reduction <add>, %220, %cst_137 [1] : vector<2x32xf32> to vector<2xf32>
    %222 = vector.shape_cast %221 : vector<2xf32> to vector<2x1xf32>
    %c0_138 = arith.constant 0 : index
    %c0_139 = arith.constant 0 : index
    %223 = vector.load %arg14[%c0_138, %c0_139] : memref<1x1xf32, #tpu.memory_space<vmem>>, vector<1x1xf32>
    %224 = vector.broadcast %223 : vector<1x1xf32> to vector<2x1xf32>
    %225 = arith.addf %222, %224 : vector<2x1xf32>
    %226 = arith.negf %225 : vector<2x1xf32>
    %227 = math.exp %226 : vector<2x1xf32>
    %cst_140 = arith.constant 1.000000e+00 : f32
    %228 = vector.broadcast %cst_140 : f32 to vector<2x1xf32>
    %229 = arith.addf %228, %227 : vector<2x1xf32>
    %230 = arith.divf %228, %229 : vector<2x1xf32>
    %c0_141 = arith.constant 0 : index
    %c0_142 = arith.constant 0 : index
    %231 = vector.load %arg15[%c0_141, %c0_142] : memref<2x1xf32, #tpu.memory_space<vmem>>, vector<2x1xf32>
    tpu.vector_store %arg15[%c0_141, %c0_142], %230 {strides = array<i32>} : memref<2x1xf32, #tpu.memory_space<vmem>>, vector<2x1xf32>,
    return
  }
  func.func @transform_0(%arg0: i32) -> (i32, i32) {
    %c0_i32 = arith.constant 0 : i32
    %c0_i32_0 = arith.constant 0 : i32
    %c0_i32_1 = arith.constant 0 : i32
    return %c0_i32, %c0_i32_0 : i32, i32
  }
  func.func @transform_1(%arg0: i32) -> (i32, i32) {
    %c0_i32 = arith.constant 0 : i32
    %c0_i32_0 = arith.constant 0 : i32
    %c0_i32_1 = arith.constant 0 : i32
    return %c0_i32, %c0_i32_0 : i32, i32
  }
  func.func @transform_2(%arg0: i32) -> (i32, i32, i32) {
    %c0_i32 = arith.constant 0 : i32
    %c0_i32_0 = arith.constant 0 : i32
    %c0_i32_1 = arith.constant 0 : i32
    %c0_i32_2 = arith.constant 0 : i32
    return %c0_i32, %c0_i32_0, %c0_i32_1 : i32, i32, i32
  }
  func.func @transform_3(%arg0: i32) -> (i32, i32) {
    %c0_i32 = arith.constant 0 : i32
    %c0_i32_0 = arith.constant 0 : i32
    %c0_i32_1 = arith.constant 0 : i32
    return %c0_i32, %c0_i32_0 : i32, i32
  }
  func.func @transform_4(%arg0: i32) -> (i32, i32, i32) {
    %c0_i32 = arith.constant 0 : i32
    %c0_i32_0 = arith.constant 0 : i32
    %c0_i32_1 = arith.constant 0 : i32
    %c0_i32_2 = arith.constant 0 : i32
    return %c0_i32, %c0_i32_0, %c0_i32_1 : i32, i32, i32
  }
  func.func @transform_5(%arg0: i32) -> (i32, i32) {
    %c0_i32 = arith.constant 0 : i32
    %c0_i32_0 = arith.constant 0 : i32
    %c0_i32_1 = arith.constant 0 : i32
    return %c0_i32, %c0_i32_0 : i32, i32
  }
  func.func @transform_6(%arg0: i32) -> (i32, i32) {
    %c0_i32 = arith.constant 0 : i32
    %c0_i32_0 = arith.constant 0 : i32
    %c0_i32_1 = arith.constant 0 : i32
    return %c0_i32, %c0_i32_0 : i32, i32
  }
  func.func @transform_7(%arg0: i32) -> (i32, i32) {
    %c0_i32 = arith.constant 0 : i32
    %c0_i32_0 = arith.constant 0 : i32
    %c0_i32_1 = arith.constant 0 : i32
    return %c0_i32, %c0_i32_0 : i32, i32
  }
  func.func @transform_8(%arg0: i32) -> (i32, i32) {
    %c0_i32 = arith.constant 0 : i32
    %c0_i32_0 = arith.constant 0 : i32
    %c0_i32_1 = arith.constant 0 : i32
    return %c0_i32, %c0_i32_0 : i32, i32
  }
  func.func @transform_9(%arg0: i32) -> (i32, i32) {
    %c0_i32 = arith.constant 0 : i32
    %c0_i32_0 = arith.constant 0 : i32
    %c0_i32_1 = arith.constant 0 : i32
    return %c0_i32, %c0_i32_0 : i32, i32
  }
  func.func @transform_10(%arg0: i32) -> (i32, i32) {
    %c0_i32 = arith.constant 0 : i32
    %c0_i32_0 = arith.constant 0 : i32
    %c0_i32_1 = arith.constant 0 : i32
    return %c0_i32, %c0_i32_0 : i32, i32
  }
  func.func @transform_11(%arg0: i32) -> (i32, i32) {
    %c0_i32 = arith.constant 0 : i32
    %c0_i32_0 = arith.constant 0 : i32
    %c0_i32_1 = arith.constant 0 : i32
    return %c0_i32, %c0_i32_0 : i32, i32
  }
  func.func @transform_12(%arg0: i32) -> (i32, i32) {
    %c0_i32 = arith.constant 0 : i32
    %c0_i32_0 = arith.constant 0 : i32
    %c0_i32_1 = arith.constant 0 : i32
    return %c0_i32, %c0_i32_0 : i32, i32
  }
  func.func @transform_13(%arg0: i32) -> (i32, i32) {
    %c0_i32 = arith.constant 0 : i32
    %c0_i32_0 = arith.constant 0 : i32
    %c0_i32_1 = arith.constant 0 : i32
    return %c0_i32, %c0_i32_0 : i32, i32
  }
  func.func @transform_14(%arg0: i32) -> (i32, i32) {
    %c0_i32 = arith.constant 0 : i32
    %c0_i32_0 = arith.constant 0 : i32
    %c0_i32_1 = arith.constant 0 : i32
    return %c0_i32, %c0_i32_0 : i32, i32
  }
}

</mosaic_0001>

<bundles_post_ra>
// kernel: simple_net_forward.1
= control target key start
LH: loop header
LB: loop body
LE: loop exit
PB: predicated region body
PF: predicated region fallthrough
CT: control target
= control target key end

     0   :  { %v2781_v0 = vmov 0.0   ;;  %vm2782_vm0 = vmmov 0   ;;  %vm107_vm1 = vcmask 654336   ;;  %vm746_vm2 = vcmask 785408   ;;  %s2786_s21 = smov 96   ;;  %s3378_s2 = inlined_call_operand.vmem [shape: bf16[5,80,128], index: 2, kind: input, shape index: {}]   ;;  %s3379_s1 = inlined_call_operand.vmem [shape: f32[20,80], index: 1, kind: input, shape index: {}]   ;;  %s3380_s0 = inlined_call_operand.vmem [shape: f32[20,80], index: 0, kind: input, shape index: {}]   ;;  %s3381_s4 = inlined_call_operand.vmem [shape: bf16[5,96,64], index: 4, kind: input, shape index: {}]   ;;  %s3382_s3 = inlined_call_operand.vmem [shape: f32[1,64], index: 3, kind: input, shape index: {}]   ;;  %s3383_s6 = inlined_call_operand.vmem [shape: f32[64,8], index: 6, kind: input, shape index: {}]   ;;  %s3384_s5 = inlined_call_operand.vmem [shape: f32[1,64], index: 5, kind: input, shape index: {}]   ;;  %s3385_s7 = inlined_call_operand.vmem [shape: f32[8,64], index: 7, kind: input, shape index: {}]   ;;  %s3386_s8 = inlined_call_operand.vmem [shape: f32[2,8], index: 8, kind: input, shape index: {}]   ;;  %s3387_s9 = inlined_call_operand.vmem [shape: f32[128,32], index: 9, kind: input, shape index: {}]   ;;  %s3388_s13 = inlined_call_operand.<no memory space> [shape: f32[1,1], index: 13, kind: input, shape index: {}]   ;;  %s3389_s10 = inlined_call_operand.vmem [shape: f32[1,32], index: 10, kind: input, shape index: {}]   ;;  %s3390_s11 = inlined_call_operand.vmem [shape: f32[2,32], index: 11, kind: input, shape index: {}]   ;;  %s3391_s12 = inlined_call_operand.vmem [shape: f32[1,32], index: 12, kind: input, shape index: {}]   ;;  %s3392_s14 = inlined_call_operand.vmem [shape: f32[2,1], index: 14, kind: output, shape index: {}]  }
   0x1   :  { %2320 = vmatprep.subr.bf16.mxu0 %v2781_v0  ;;  %2390 = vmatprep.subr.bf16.mxu1 %v2781_v0  ;;  %v2718_v1 = vld [vmem:[%s3378_s2 + $0x28] sm:$0xff]   ;;  %v2719_v2 = vld [vmem:[%s3378_s2 + $0x30] sm:$0xff]   ;;  %v2720_v3 = vld [vmem:[%s3378_s2 + $0x38] sm:$0xff]   ;;  %747 = vst.msk [vmem:[#allocation2] sm:$0xff] %vm746_vm2, %v2781_v0  ;;  %vm758_vm3 = vcmask 654464   ;;  %vm1255_vm4 = vcmask 523264  }
   0x2   :  { %2330 = vmatprep.mubr.msk.bf16.mxu0 %vm2782_vm0, %v2781_v0  ;;  %2400 = vmatprep.mubr.msk.bf16.mxu1 %vm2782_vm0, %v2781_v0  ;;  %v2721_v4 = vld [vmem:[%s3378_s2 + $0x40] sm:$0xff]   ;;  %v2722_v5 = vld [vmem:[%s3378_s2 + $0x48] sm:$0xff]   ;;  %v2725_v14 = vld [vmem:[%s3378_s2 + $0x10] sm:$0xff]   ;;  %748 = vst.msk [vmem:[#allocation2 + $0x8] sm:$0xff] %vm746_vm2, %v2781_v0  ;;  %vm1444_vm5 = vcmask 64512   ;;  %vm1624_vm6 = vcmask 261120  }
   0x3   :  { %2321 = vmatpush3.bf16.msra.mxu0 %v2718_v1  ;;  %2391 = vmatpush3.bf16.msra.mxu1 %v2718_v1  ;;  %v63_v6 = vld [vmem:[%s3379_s1] sm:$0xff]  ;;  %v64_v7 = vld [vmem:[%s3379_s1 + $0x8] sm:$0xff]  ;;  %v2726_v15 = vld [vmem:[%s3378_s2 + $0x18] sm:$0xff]   ;;  %749 = vst.msk [vmem:[#allocation2 + $0x10] sm:$0xff] %vm746_vm2, %v2781_v0  ;;  %vm1942_vm7 = vcmask 254976   ;;  %vm2003_vm8 = vcmask 1024  }
   0x4   :  { %2322 = vmatprep.subr.bf16.mxu0 %v2781_v0  ;;  %2392 = vmatprep.subr.bf16.mxu1 %v2781_v0  ;;  %v226_v8 = vld [vmem:[%s3380_s0 + $0x2] sm:$0xff]  ;;  %v227_v9 = vld [vmem:[%s3380_s0 + $0xa] sm:$0xff]  ;;  %v65_v10 = vpack.c.bf16 %v64_v7, %v63_v6  ;;  %v2729_v21 = vld [vmem:[%s3378_s2 + $0x58] sm:$0xff]  }
   0x5   :  { %v2903_v11 = vpack.c.bf16 %v227_v9, %v226_v8  ;;  %v2723_v12 = vld [vmem:[%s3378_s2] sm:$0xff]   ;;  %v2724_v13 = vld [vmem:[%s3378_s2 + $0x8] sm:$0xff]   ;;  %v2728_v20 = vld [vmem:[%s3378_s2 + $0x50] sm:$0xff]  }
   0x6   :  { %v2727_v16 = vld [vmem:[%s3378_s2 + $0x20] sm:$0xff]   ;;  %v51_v18 = vld [vmem:[%s3380_s0 + $0x8] sm:$0xff]  ;;  %v2732_v24 = vld [vmem:[%s3378_s2 + $0x70] sm:$0xff]  }
   0x7   :  { %2323 = vmatpush3.bf16.msra.mxu0 %v2719_v2  ;;  %2393 = vmatpush3.bf16.msra.mxu1 %v2719_v2  ;;  %v50_v17 = vld [vmem:[%s3380_s0] sm:$0xff]  ;;  %v2731_v23 = vld [vmem:[%s3378_s2 + $0x68] sm:$0xff]   ;;  %v2733_v28 = vld [vmem:[%s3378_s2 + $0x78] sm:$0xff]  }
   0x8   :  { %2324 = vmatprep.subr.bf16.mxu0 %v2781_v0  ;;  %2394 = vmatprep.subr.bf16.mxu1 %v2781_v0  ;;  %v52_v19 = vpack.c.bf16 %v51_v18, %v50_v17  ;;  %v2730_v22 = vld [vmem:[%s3378_s2 + $0x60] sm:$0xff]   ;;  %v317_v26 = vld [vmem:[%s3379_s1 + $0xa] sm:$0xff]  ;;  %v2737_v32 = vld [vmem:[%s3378_s2 + $0x98] sm:$0xff]  }
   0x9   :  { %v316_v25 = vld [vmem:[%s3379_s1 + $0x2] sm:$0xff]  ;;  %v2736_v31 = vld [vmem:[%s3378_s2 + $0x90] sm:$0xff]   ;;  %v2741_v39 = vld [vmem:[%s3378_s2 + $0xb8] sm:$0xff]  }
   0xa   :  { %v318_v27 = vpack.c.bf16 %v317_v26, %v316_v25  ;;  %v2734_v29 = vld [vmem:[%s3378_s2 + $0x80] sm:$0xff]   ;;  %v2735_v30 = vld [vmem:[%s3378_s2 + $0x88] sm:$0xff]   ;;  %v2740_v38 = vld [vmem:[%s3378_s2 + $0xb0] sm:$0xff]  }
   0xb   :  { %2325 = vmatpush3.bf16.msra.mxu0 %v2720_v3  ;;  %2395 = vmatpush3.bf16.msra.mxu1 %v2720_v3  ;;  %v406_v33 = vld [vmem:[%s3380_s0 + $0x4] sm:$0xff]  ;;  %v407_v34 = vld [vmem:[%s3380_s0 + $0xc] sm:$0xff]  ;;  %v2745_v54 = vld [vmem:[%s3381_s4 + $0x38] sm:$0xff]  }
   0xc   :  { %2326 = vmatprep.subr.bf16.mxu0 %v2781_v0  ;;  %2396 = vmatprep.subr.bf16.mxu1 %v2781_v0  ;;  %v408_v35 = vpack.c.bf16 %v407_v34, %v406_v33  ;;  %v2738_v36 = vld [vmem:[%s3378_s2 + $0xa0] sm:$0xff]   ;;  %v2739_v37 = vld [vmem:[%s3378_s2 + $0xa8] sm:$0xff]   ;;  %v2743_v50 = vld [vmem:[%s3381_s4 + $0x30] sm:$0xff]  }
   0xd   :  { %v2742_v40 = vld [vmem:[%s3378_s2 + $0xc0] sm:$0xff]   ;;  %v665_v42 = vld [vmem:[%s3379_s1 + $0xc] sm:$0xff]  ;;  %v2750_v59 = vld [vmem:[%s3381_s4 + $0x18] sm:$0xff]  }
   0xe   :  { %v664_v41 = vld [vmem:[%s3379_s1 + $0x4] sm:$0xff]  ;;  %s2783_s1 = smov 64   ;;  %v2748_v57 = vld [vmem:[%s3381_s4 + $0x10] sm:$0xff]   ;;  %v2084_v3 = vld [vmem:[%s3382_s3] ss:$0 sm:$0xff]  ;;  %s2784_s3 = smov 16  }
   0xf   :  { %2327 = vmatpush3.bf16.msra.mxu0 %v2721_v4  ;;  %2397 = vmatpush3.bf16.msra.mxu1 %v2721_v4  ;;  %v666_v43 = vpack.c.bf16 %v665_v42, %v664_v41  ;;  %v2744_v51 = vld [vmem:[%s3381_s4] sm:$0xff]   ;;  %v2746_v55 = vld [vmem:[%s3381_s4 + $0x8] sm:$0xff]   ;;  %v2751_v62 = vld [vmem:[%s3381_s4 + $0x50] sm:$0xff]  }
  0x10   :  { %2328 = vmatprep.subr.bf16.mxu0 %v2781_v0  ;;  %2398 = vmatprep.subr.bf16.mxu1 %v2781_v0  ;;  %v2747_v56 = vld [vmem:[%s3381_s4 + $0x40] sm:$0xff]   ;;  %v2749_v58 = vld [vmem:[%s3381_s4 + $0x48] sm:$0xff]   ;;  %v2753_v4 = vld [vmem:[%s3381_s4 + $0x58] sm:$0xff]  }
  0x11   :  { %v2752_v63 = vld [vmem:[%s3381_s4 + $0x20] sm:$0xff]   ;;  %v2757_v26 = vld [vmem:[%s3381_s4 + $0x68] sm:$0xff]   ;;  %v2764_v33 = vld [vmem:[%s3381_s4 + $0xb0] sm:$0xff]  }
  0x12   :  { %v2765_v34 = vld [vmem:[%s3381_s4 + $0x88] sm:$0xff]  }
  0x13   :  { %2329 = vmatpush3.bf16.msra.mxu0 %v2722_v5  ;;  %2399 = vmatpush3.bf16.msra.mxu1 %v2722_v5  ;;  %v2754_v5 = vld [vmem:[%s3381_s4 + $0x28] sm:$0xff]  }
  0x14   :  { %2334 = vmatprep.subr.bf16.mxu0 %v2781_v0  ;;  %2404 = vmatprep.subr.bf16.mxu1 %v2781_v0 }
  0x16   :  { %2331 = vmatmul.mubr.msk.bf16.vlgmr.msra.gmra.mrb[0].mxu0 %vm107_vm1, %v65_v10  ;;  %2401 = vmatmul.mubr.msk.bf16.vlgmr.msra.gmra.mrb[0].mxu1 %vm107_vm1, %v2903_v11 }
  0x17   :  { %2335 = vmatpush3.bf16.msra.mxu0 %v2723_v12  ;;  %2405 = vmatpush3.bf16.msra.mxu1 %v2723_v12 }
  0x18   :  { %2336 = vmatprep.subr.bf16.mxu0 %v2781_v0  ;;  %2406 = vmatprep.subr.bf16.mxu1 %v2781_v0 }
  0x19   :  { %2344 = vmatprep.mubr.msk.bf16.mxu0 %vm2782_vm0, %v2781_v0  ;;  %2414 = vmatprep.mubr.msk.bf16.mxu1 %vm2782_vm0, %v2781_v0 }
  0x1b   :  { %2337 = vmatpush3.bf16.msra.mxu0 %v2724_v13  ;;  %2407 = vmatpush3.bf16.msra.mxu1 %v2724_v13 }
  0x1c   :  { %2338 = vmatprep.subr.bf16.mxu0 %v2781_v0  ;;  %2408 = vmatprep.subr.bf16.mxu1 %v2781_v0 }
  0x1f   :  { %2339 = vmatpush3.bf16.msra.mxu0 %v2725_v14  ;;  %2409 = vmatpush3.bf16.msra.mxu1 %v2725_v14 }
  0x20   :  { %2340 = vmatprep.subr.bf16.mxu0 %v2781_v0  ;;  %2410 = vmatprep.subr.bf16.mxu1 %v2781_v0 }
  0x23   :  { %2341 = vmatpush3.bf16.msra.mxu0 %v2726_v15  ;;  %2411 = vmatpush3.bf16.msra.mxu1 %v2726_v15 }
  0x24   :  { %2342 = vmatprep.subr.bf16.mxu0 %v2781_v0  ;;  %2412 = vmatprep.subr.bf16.mxu1 %v2781_v0 }
  0x27   :  { %2343 = vmatpush3.bf16.msra.mxu0 %v2727_v16  ;;  %2413 = vmatpush3.bf16.msra.mxu1 %v2727_v16 }
  0x28   :  { %2348 = vmatprep.subr.bf16.mxu0 %v2781_v0  ;;  %2418 = vmatprep.subr.bf16.mxu1 %v2781_v0 }
  0x2a   :  { %2345 = vmatmul.mubr.msk.bf16.vlgmr.msra.gmra.mrb[0].mxu0 %vm107_vm1, %v52_v19  ;;  %2415 = vmatmul.mubr.msk.bf16.vlgmr.msra.gmra.mrb[0].mxu1 %vm107_vm1, %v65_v10  ;;  %v2755_v19 = vld [vmem:[%s3381_s4 + $0x60] sm:$0xff]  }
  0x2b   :  { %2349 = vmatpush3.bf16.msra.mxu0 %v2728_v20  ;;  %2419 = vmatpush3.bf16.msra.mxu1 %v2728_v20  ;;  %v2756_v20 = vld [vmem:[%s3381_s4 + $0x90] sm:$0xff]  }
  0x2c   :  { %2350 = vmatprep.subr.bf16.mxu0 %v2781_v0  ;;  %2420 = vmatprep.subr.bf16.mxu1 %v2781_v0 }
  0x2d   :  { %2358 = vmatprep.mubr.msk.bf16.mxu0 %vm2782_vm0, %v2781_v0  ;;  %2428 = vmatprep.mubr.msk.bf16.mxu1 %vm2782_vm0, %v2781_v0 }
  0x2f   :  { %2351 = vmatpush3.bf16.msra.mxu0 %v2729_v21  ;;  %2421 = vmatpush3.bf16.msra.mxu1 %v2729_v21 }
  0x30   :  { %2352 = vmatprep.subr.bf16.mxu0 %v2781_v0  ;;  %2422 = vmatprep.subr.bf16.mxu1 %v2781_v0 }
  0x33   :  { %2353 = vmatpush3.bf16.msra.mxu0 %v2730_v22  ;;  %2423 = vmatpush3.bf16.msra.mxu1 %v2730_v22 }
  0x34   :  { %2354 = vmatprep.subr.bf16.mxu0 %v2781_v0  ;;  %2424 = vmatprep.subr.bf16.mxu1 %v2781_v0 }
  0x37   :  { %2355 = vmatpush3.bf16.msra.mxu0 %v2731_v23  ;;  %2425 = vmatpush3.bf16.msra.mxu1 %v2731_v23 }
  0x38   :  { %2356 = vmatprep.subr.bf16.mxu0 %v2781_v0  ;;  %2426 = vmatprep.subr.bf16.mxu1 %v2781_v0 }
  0x3b   :  { %2357 = vmatpush3.bf16.msra.mxu0 %v2732_v24  ;;  %2427 = vmatpush3.bf16.msra.mxu1 %v2732_v24 }
  0x3c   :  { %2362 = vmatprep.subr.bf16.mxu0 %v2781_v0  ;;  %2432 = vmatprep.subr.bf16.mxu1 %v2781_v0 }
  0x3e   :  { %2359 = vmatmul.mubr.msk.bf16.vlgmr.msra.gmra.mrb[0].mxu0 %vm107_vm1, %v2903_v11  ;;  %2429 = vmatmul.mubr.msk.bf16.vlgmr.msra.gmra.mrb[0].mxu1 %vm107_vm1, %v318_v27 }
  0x3f   :  { %2363 = vmatpush3.bf16.msra.mxu0 %v2733_v28  ;;  %2433 = vmatpush3.bf16.msra.mxu1 %v2733_v28  ;;  %v2759_v28 = vld [vmem:[%s3381_s4 + $0x70] sm:$0xff]  }
  0x40   :  { %2364 = vmatprep.subr.bf16.mxu0 %v2781_v0  ;;  %2434 = vmatprep.subr.bf16.mxu1 %v2781_v0 }
  0x41   :  { %2372 = vmatprep.mubr.msk.bf16.mxu0 %vm2782_vm0, %v2781_v0  ;;  %2442 = vmatprep.mubr.msk.bf16.mxu1 %vm2782_vm0, %v2781_v0 }
  0x43   :  { %2365 = vmatpush3.bf16.msra.mxu0 %v2734_v29  ;;  %2435 = vmatpush3.bf16.msra.mxu1 %v2734_v29  ;;  %v2760_v29 = vld [vmem:[%s3381_s4 + $0xa0] sm:$0xff]  }
  0x44   :  { %2366 = vmatprep.subr.bf16.mxu0 %v2781_v0  ;;  %2436 = vmatprep.subr.bf16.mxu1 %v2781_v0 }
  0x47   :  { %2367 = vmatpush3.bf16.msra.mxu0 %v2735_v30  ;;  %2437 = vmatpush3.bf16.msra.mxu1 %v2735_v30  ;;  %v2761_v30 = vld [vmem:[%s3381_s4 + $0x78] sm:$0xff]  }
  0x48   :  { %2368 = vmatprep.subr.bf16.mxu0 %v2781_v0  ;;  %2438 = vmatprep.subr.bf16.mxu1 %v2781_v0 }
  0x4b   :  { %2369 = vmatpush3.bf16.msra.mxu0 %v2736_v31  ;;  %2439 = vmatpush3.bf16.msra.mxu1 %v2736_v31  ;;  %v2762_v31 = vld [vmem:[%s3381_s4 + $0xa8] sm:$0xff]  }
  0x4c   :  { %2370 = vmatprep.subr.bf16.mxu0 %v2781_v0  ;;  %2440 = vmatprep.subr.bf16.mxu1 %v2781_v0 }
  0x4f   :  { %2371 = vmatpush3.bf16.msra.mxu0 %v2737_v32  ;;  %2441 = vmatpush3.bf16.msra.mxu1 %v2737_v32  ;;  %v2763_v32 = vld [vmem:[%s3381_s4 + $0x80] sm:$0xff]  }
  0x50   :  { %2376 = vmatprep.subr.bf16.mxu0 %v2781_v0  ;;  %2446 = vmatprep.subr.bf16.mxu1 %v2781_v0 }
  0x52   :  { %2373 = vmatmul.mubr.msk.bf16.vlgmr.msra.gmra.mrb[0].mxu0 %vm107_vm1, %v318_v27  ;;  %2443 = vmatmul.mubr.msk.bf16.vlgmr.msra.gmra.mrb[0].mxu1 %vm107_vm1, %v408_v35  ;;  %v2758_v27 = vld [vmem:[%s3381_s4 + $0x98] sm:$0xff]  }
  0x53   :  { %2377 = vmatpush3.bf16.msra.mxu0 %v2738_v36  ;;  %2447 = vmatpush3.bf16.msra.mxu1 %v2738_v36 }
  0x54   :  { %2378 = vmatprep.subr.bf16.mxu0 %v2781_v0  ;;  %2448 = vmatprep.subr.bf16.mxu1 %v2781_v0 }
  0x55   :  { %2386 = vmatprep.mubr.msk.bf16.mxu0 %vm2782_vm0, %v2781_v0  ;;  %2456 = vmatprep.mubr.msk.bf16.mxu1 %vm2782_vm0, %v2781_v0 }
  0x57   :  { %2379 = vmatpush3.bf16.msra.mxu0 %v2739_v37  ;;  %2449 = vmatpush3.bf16.msra.mxu1 %v2739_v37 }
  0x58   :  { %2380 = vmatprep.subr.bf16.mxu0 %v2781_v0  ;;  %2450 = vmatprep.subr.bf16.mxu1 %v2781_v0 }
  0x5b   :  { %2381 = vmatpush3.bf16.msra.mxu0 %v2740_v38  ;;  %2451 = vmatpush3.bf16.msra.mxu1 %v2740_v38 }
  0x5c   :  { %2382 = vmatprep.subr.bf16.mxu0 %v2781_v0  ;;  %2452 = vmatprep.subr.bf16.mxu1 %v2781_v0 }
  0x5f   :  { %2383 = vmatpush3.bf16.msra.mxu0 %v2741_v39  ;;  %2453 = vmatpush3.bf16.msra.mxu1 %v2741_v39 }
  0x60   :  { %2384 = vmatprep.subr.bf16.mxu0 %v2781_v0  ;;  %2454 = vmatprep.subr.bf16.mxu1 %v2781_v0 }
  0x63   :  { %2385 = vmatpush3.bf16.msra.mxu0 %v2742_v40  ;;  %2455 = vmatpush3.bf16.msra.mxu1 %v2742_v40  ;;  %v2767_v40 = vld [vmem:[%s3381_s4 + $0xc0] sm:$0xff]  }
  0x64   :  { %2460 = vmatprep.subr.bf16.mxu0 %v2781_v0  ;;  %2476 = vmatprep.subr.bf16.mxu1 %v2781_v0 }
  0x66   :  { %2387 = vmatmul.mubr.msk.bf16.vlgmr.msra.gmra.mrb[0].mxu0 %vm107_vm1, %v408_v35  ;;  %2457 = vmatmul.mubr.msk.bf16.vlgmr.msra.gmra.mrb[0].mxu1 %vm107_vm1, %v666_v43  ;;  %v2766_v35 = vld [vmem:[%s3381_s4 + $0xb8] sm:$0xff]   ;;  %v2768_v43 = vld [vmem:[%s3381_s4 + $0xc8] sm:$0xff]  }
  0x67   :  { %2472 = vmatprep.mubr.msk.bf16.mxu0 %vm2782_vm0, %v2781_v0  ;;  %2488 = vmatprep.mubr.msk.bf16.mxu1 %vm2782_vm0, %v2781_v0 }
  0x68   :  { %2461 = vmatpush3.bf16.msra.mxu0 %v2743_v50  ;;  %2477 = vmatpush3.bf16.msra.mxu1 %v2744_v51  ;;  %v1276_v50 = vld [vmem:[%s3383_s6] sm:$0xff]  ;;  %v1277_v51 = vld [vmem:[%s3383_s6 + $0x8] sm:$0xff] }
  0x69   :  { %2462 = vmatprep.subr.bf16.mxu0 %v2781_v0  ;;  %2478 = vmatprep.subr.bf16.mxu1 %v2781_v0 }
  0x6c   :  { %2463 = vmatpush3.bf16.msra.mxu0 %v2745_v54  ;;  %2479 = vmatpush3.bf16.msra.mxu1 %v2746_v55  ;;  %v1278_v54 = vld [vmem:[%s3383_s6 + $0x10] sm:$0xff]  ;;  %v1279_v55 = vld [vmem:[%s3383_s6 + $0x18] sm:$0xff] }
  0x6d   :  { %2464 = vmatprep.subr.bf16.mxu0 %v2781_v0  ;;  %2480 = vmatprep.subr.bf16.mxu1 %v2781_v0 }
  0x70   :  { %2465 = vmatpush3.bf16.msra.mxu0 %v2747_v56  ;;  %2481 = vmatpush3.bf16.msra.mxu1 %v2748_v57  ;;  %v3227_v56 = vpack.c.bf16 %v1279_v55, %v1278_v54  ;;  %v1280_v57 = vld [vmem:[%s3383_s6 + $0x20] sm:$0xff] }
  0x71   :  { %2466 = vmatprep.subr.bf16.mxu0 %v2781_v0  ;;  %2482 = vmatprep.subr.bf16.mxu1 %v2781_v0 }
  0x74   :  { %2467 = vmatpush3.bf16.msra.mxu0 %v2749_v58  ;;  %2483 = vmatpush3.bf16.msra.mxu1 %v2750_v59  ;;  %v1281_v58 = vld [vmem:[%s3383_s6 + $0x28] sm:$0xff] }
  0x75   :  { %2468 = vmatprep.subr.bf16.mxu0 %v2781_v0  ;;  %2484 = vmatprep.subr.bf16.mxu1 %v2781_v0  ;;  %v3237_v59 = vpack.c.bf16 %v1281_v58, %v1280_v57 }
  0x78   :  { %2469 = vmatpush3.bf16.msra.mxu0 %v2751_v62  ;;  %2485 = vmatpush3.bf16.msra.mxu1 %v2752_v63 }
  0x79   :  { %2470 = vmatprep.subr.bf16.mxu0 %v2781_v0  ;;  %2486 = vmatprep.subr.bf16.mxu1 %v2781_v0 }
  0x7c   :  { %2471 = vmatpush3.bf16.msra.mxu0 %v2753_v4  ;;  %2487 = vmatpush3.bf16.msra.mxu1 %v2754_v5 }
  0x7d   :  { %2492 = vmatprep.subr.bf16.mxu0 %v2781_v0  ;;  %2508 = vmatprep.subr.bf16.mxu1 %v2781_v0 }
 0x139   :  { %v487_v44 = vpop.f32.mrb[0].mxu0  ;;  %v704_v45 = vpop.f32.mrb[0].mxu1 }
 0x13a   :  { %725 = vrot.lane.b32.xlu1 %v704_v45, %s2783_s1  ;;  %v2458_v46 = vpop.f32.mrb[1].mxu1  ;;  %715 = vrot.lane.b32.xlu0 %v487_v44, %s2783_s1  ;;  %v2388_v47 = vpop.f32.mrb[1].mxu0 }
 0x13b   :  { %v490_v48 = vpop.f32.mrb[2].mxu0  ;;  %v707_v49 = vpop.f32.mrb[2].mxu1  ;;  %v2771_v46 = vld [vmem:[%s3381_s4 + $0xe0] sm:$0xff]   ;;  %v2772_v47 = vld [vmem:[%s3381_s4 + $0xe8] sm:$0xff]  }
 0x13c   :  { %v2389_v52 = vpop.f32.mrb[3].mxu0  ;;  %v2459_v53 = vpop.f32.mrb[3].mxu1 }
 0x13d   :  { %v3216_v52 = vpack.c.bf16 %v1277_v51, %v1276_v50  ;;  %v2785_v53 = vmov 0.0|0.0   ;;  %v1443_v51 = vld [vmem:[%s3385_s7] sm:$0xff] }
 0x13e   :  { %727 = vrot.lane.b32.xlu1 %v707_v49, %s2783_s1  ;;  %717 = vrot.lane.b32.xlu0 %v490_v48, %s2783_s1 }
 0x1ac   :  { %v726_v60 = vpop.permute.xlu1 %725  ;;  %v716_v61 = vpop.permute.xlu0 %715 }
 0x1ad   :  { %v731_v1 = vmax.f32 %v704_v45, %v726_v60  ;;  %v721_v2 = vmax.f32 %v487_v44, %v716_v61  ;;  %v2769_v44 = vld [vmem:[%s3381_s4 + $0xd0] sm:$0xff]   ;;  %v2770_v45 = vld [vmem:[%s3381_s4 + $0xd8] sm:$0xff]  }
 0x1ae   :  { %v1282_v60 = vld [vmem:[%s3383_s6 + $0x30] sm:$0xff]  ;;  %v1283_v61 = vld [vmem:[%s3383_s6 + $0x38] sm:$0xff] }
 0x1af   :  { %v733_v6 = vmax.f32 %v721_v2, %v731_v1  ;;  %v2642_v62 = vpack.c.bf16 %v1283_v61, %v1282_v60 }
 0x1b0   :  { %v728_v7 = vpop.permute.xlu1 %727  ;;  %v718_v8 = vpop.permute.xlu0 %717 }
 0x1b1   :  { %v732_v9 = vmax.f32 %v707_v49, %v728_v7  ;;  %v722_v10 = vmax.f32 %v490_v48, %v718_v8  ;;  %v742_v11 = vadd.f32 %v2084_v3, %v733_v6 }
 0x1b3   :  { %v734_v12 = vmax.f32 %v722_v10, %v732_v9  ;;  %v744_v13 = vmax.f32 %v742_v11, 0.0 }
 0x1b5   :  { %752 = vrot.lane.b32.xlu0 %v744_v13, %s2784_s3  ;;  %v743_v14 = vadd.f32 %v2084_v3, %v734_v12 }
 0x1b7   :  { %v745_v15 = vmax.f32 %v743_v14, 0.0 }
 0x1b9   :  { %754 = vrot.lane.b32.xlu1 %v745_v15, %s2784_s3 }
 0x227   :  { %v753_v16 = vpop.permute.xlu0 %752 }
 0x228   :  { %759 = vst.msk [vmem:[#allocation2 + $0x4] sm:$0xff] %vm758_vm3, %v753_v16 }
 0x22b   :  { %v755_v17 = vpop.permute.xlu1 %754 }
 0x22c   :  { %760 = vst.msk [vmem:[#allocation2 + $0xc] sm:$0xff] %vm758_vm3, %v755_v17 }
 0x22f   :  { %v776_v18 = vld [vmem:[#allocation2 + $0x2] sm:$0xff] }
 0x230   :  { %v761_v22 = vld [vmem:[#allocation2] sm:$0xff] }
 0x231   :  { %v952_v39 = vld [vmem:[#allocation2 + $0x4] sm:$0xff] }
 0x233   :  { %v777_v21 = vld [vmem:[#allocation2 + $0xa] sm:$0xff] }
 0x234   :  { %v3126_v23 = vld [vmem:[#allocation2 + $0x8] sm:$0xff]  ;;  %v778_v24 = vpack.c.bf16 %v777_v21, %v776_v18  ;;  %v1149_v48 = vld [vmem:[#allocation2 + $0x10] sm:$0xff] }
 0x235   :  { %v763_v25 = vpack.c.bf16 %v3126_v23, %v761_v22  ;;  %v953_v36 = vld [vmem:[#allocation2 + $0xc] sm:$0xff]  ;;  %v1150_v49 = vpack.c.bf16 %v1149_v48, %v3126_v23  ;;  %v2168_v23 = vld [vmem:[%s3384_s5] ss:$0 sm:$0xff] }
 0x236   :  { %2473 = vmatmul.mubr.msk.bf16.vlgmr.msra.gmra.mrb[4].mxu0 %vm746_vm2, %v778_v24  ;;  %v1050_v37 = vld [vmem:[#allocation2 + $0x6] sm:$0xff]  ;;  %v1051_v38 = vld [vmem:[#allocation2 + $0xe] sm:$0xff]  ;;  %v954_v41 = vpack.c.bf16 %v953_v36, %v952_v39 }
 0x237   :  { %2489 = vmatmul.mubr.msk.bf16.vlgmr.msra.gmra.mrb[4].mxu1 %vm746_vm2, %v763_v25  ;;  %2493 = vmatpush3.bf16.msra.mxu0 %v2755_v19  ;;  %v1052_v42 = vpack.c.bf16 %v1051_v38, %v1050_v37 }
 0x238   :  { %2509 = vmatpush3.bf16.msra.mxu1 %v2756_v20  ;;  %2494 = vmatprep.subr.bf16.mxu0 %v2781_v0 }
 0x239   :  { %2510 = vmatprep.subr.bf16.mxu1 %v2781_v0  ;;  %2504 = vmatprep.mubr.msk.bf16.mxu0 %vm2782_vm0, %v2781_v0 }
 0x23a   :  { %2520 = vmatprep.mubr.msk.bf16.mxu1 %vm2782_vm0, %v2781_v0 }
 0x23b   :  { %2495 = vmatpush3.bf16.msra.mxu0 %v2757_v26 }
 0x23c   :  { %2511 = vmatpush3.bf16.msra.mxu1 %v2758_v27  ;;  %2496 = vmatprep.subr.bf16.mxu0 %v2781_v0 }
 0x23d   :  { %2512 = vmatprep.subr.bf16.mxu1 %v2781_v0 }
 0x23f   :  { %2497 = vmatpush3.bf16.msra.mxu0 %v2759_v28 }
 0x240   :  { %2513 = vmatpush3.bf16.msra.mxu1 %v2760_v29  ;;  %2498 = vmatprep.subr.bf16.mxu0 %v2781_v0 }
 0x241   :  { %2514 = vmatprep.subr.bf16.mxu1 %v2781_v0 }
 0x243   :  { %2499 = vmatpush3.bf16.msra.mxu0 %v2761_v30 }
 0x244   :  { %2515 = vmatpush3.bf16.msra.mxu1 %v2762_v31  ;;  %2500 = vmatprep.subr.bf16.mxu0 %v2781_v0 }
 0x245   :  { %2516 = vmatprep.subr.bf16.mxu1 %v2781_v0 }
 0x247   :  { %2501 = vmatpush3.bf16.msra.mxu0 %v2763_v32 }
 0x248   :  { %2517 = vmatpush3.bf16.msra.mxu1 %v2764_v33  ;;  %2502 = vmatprep.subr.bf16.mxu0 %v2781_v0 }
 0x249   :  { %2518 = vmatprep.subr.bf16.mxu1 %v2781_v0 }
 0x24b   :  { %2503 = vmatpush3.bf16.msra.mxu0 %v2765_v34 }
 0x24c   :  { %2519 = vmatpush3.bf16.msra.mxu1 %v2766_v35  ;;  %2524 = vmatprep.subr.bf16.mxu0 %v2781_v0 }
 0x24d   :  { %2632 = vmatprep.subr.bf16.mxu1 %v2785_v53 }
 0x24e   :  { %2505 = vmatmul.mubr.msk.bf16.vlgmr.msra.gmra.mrb[8].mxu0 %vm746_vm2, %v954_v41 }
 0x24f   :  { %2521 = vmatmul.mubr.msk.bf16.vlgmr.msra.gmra.mrb[8].mxu1 %vm746_vm2, %v1052_v42  ;;  %2525 = vmatpush3.bf16.msra.mxu0 %v2767_v40 }
 0x250   :  { %2536 = vmatprep.mubr.msk.bf16.mxu0 %vm2782_vm0, %v2781_v0  ;;  %2526 = vmatprep.subr.bf16.mxu0 %v2781_v0 }
 0x251   :  { %2556 = vmatprep.mubr.msk.f32.mxu1 %vm2782_vm0, %v2781_v0  ;;  %2634 = vmatpush3.bf16.msra.mxu1 %v3216_v52 }
 0x252   :  { %2635 = vmatprep.subr.bf16.mxu1 %v2785_v53 }
 0x253   :  { %2527 = vmatpush3.bf16.msra.mxu0 %v2768_v43 }
 0x254   :  { %2528 = vmatprep.subr.bf16.mxu0 %v2781_v0 }
 0x255   :  { %2637 = vmatpush3.bf16.msra.mxu1 %v3227_v56 }
 0x256   :  { %2638 = vmatprep.subr.bf16.mxu1 %v2785_v53 }
 0x257   :  { %2529 = vmatpush3.bf16.msra.mxu0 %v2769_v44 }
 0x258   :  { %2530 = vmatprep.subr.bf16.mxu0 %v2781_v0 }
 0x259   :  { %2640 = vmatpush3.bf16.msra.mxu1 %v3237_v59 }
 0x25a   :  { %2641 = vmatprep.subr.bf16.mxu1 %v2785_v53 }
 0x25b   :  { %2531 = vmatpush3.bf16.msra.mxu0 %v2770_v45 }
 0x25c   :  { %2532 = vmatprep.subr.bf16.mxu0 %v2781_v0 }
 0x25d   :  { %2643 = vmatpush3.bf16.msra.mxu1 %v2642_v62 }
 0x25e   :  { %2644 = vmatprep.subr.bf16.mxu1 %v2785_v53 }
 0x25f   :  { %2533 = vmatpush3.bf16.msra.mxu0 %v2771_v46 }
 0x260   :  { %2534 = vmatprep.subr.bf16.mxu0 %v2781_v0 }
 0x263   :  { %2535 = vmatpush3.bf16.msra.mxu0 %v2772_v47 }
 0x264   :  { %2578 = vmatprep.subr.mxu0 %v2781_v0 }
 0x266   :  { %2537 = vmatmul.mubr.msk.bf16.vlgmr.msra.gmra.mrb[12].mxu0 %vm746_vm2, %v1150_v49 }
 0x267   :  { %2580 = vmatprep.mubr.msk.f32.mxu0 %vm2782_vm0, %v2781_v0  ;;  %2579 = vmatpush3.msra.mxu0 %v1443_v51 }
 0x268   :  { %2583 = vmatprep.subr.mxu0 %v2781_v0 }
 0x309   :  { %v865_v63 = vpop.f32.mrb[4].mxu0 }
 0x30a   :  { %v945_v1 = vpop.f32.mrb[4].mxu1  ;;  %v2474_v3 = vpop.f32.mrb[5].mxu0 }
 0x30b   :  { %v946_v2 = vadd.f32 %v945_v1, %v865_v63  ;;  %v2490_v4 = vpop.f32.mrb[5].mxu1  ;;  %v868_v5 = vpop.f32.mrb[6].mxu0  ;;  %v1436_v63 = vld [vmem:[%s3386_s8] sm:$0x1]  ;;  %v1440_v3 = vld [vmem:[%s3386_s8 + $0x1] sm:$0x1] }
 0x30c   :  { %v948_v6 = vpop.f32.mrb[6].mxu1  ;;  %v2475_v8 = vpop.f32.mrb[7].mxu0 }
 0x30d   :  { %v949_v7 = vadd.f32 %v948_v6, %v868_v5  ;;  %v2491_v9 = vpop.f32.mrb[7].mxu1  ;;  %v1614_v6 = vld [vmem:[%s3387_s9] sm:$0xff] }
 0x30e   :  { %v1591_v9 = vlaneseq }
 0x321   :  { %v1041_v10 = vpop.f32.mrb[8].mxu0 }
 0x322   :  { %v1139_v11 = vpop.f32.mrb[8].mxu1  ;;  %v1048_v12 = vadd.f32 %v1041_v10, %v946_v2  ;;  %v2506_v13 = vpop.f32.mrb[9].mxu0  ;;  %v1592_v10 = vshrl.u32 %v1591_v9, 7 }
 0x323   :  { %v2522_v14 = vpop.f32.mrb[9].mxu1  ;;  %v1044_v15 = vpop.f32.mrb[10].mxu0 }
 0x324   :  { %v1142_v16 = vpop.f32.mrb[10].mxu1  ;;  %v1146_v17 = vadd.f32 %v1139_v11, %v1048_v12  ;;  %v1049_v18 = vadd.f32 %v1044_v15, %v949_v7  ;;  %v2507_v19 = vpop.f32.mrb[11].mxu0  ;;  %v1615_v7 = vld [vmem:[%s3387_s9 + $0x8] sm:$0xff]  ;;  %v1618_v11 = vld [vmem:[%s3387_s9 + $0x20] sm:$0xff]  ;;  %v1593_v14 = vsub.s32 0, %v1592_v10  ;;  %v1616_v15 = vld [vmem:[%s3387_s9 + $0x10] sm:$0xff] }
 0x325   :  { %v2523_v20 = vpop.f32.mrb[11].mxu1  ;;  %v2663_v8 = vpack.c.bf16 %v1615_v7, %v1614_v6  ;;  %v1619_v12 = vld [vmem:[%s3387_s9 + $0x28] sm:$0xff]  ;;  %v1621_v19 = vld [vmem:[%s3387_s9 + $0x38] sm:$0xff] }
 0x326   :  { %v1147_v21 = vadd.f32 %v1142_v16, %v1049_v18  ;;  %v2657_v13 = vpack.c.bf16 %v1619_v12, %v1618_v11  ;;  %v1617_v16 = vld [vmem:[%s3387_s9 + $0x18] sm:$0xff]  ;;  %v1620_v18 = vld [vmem:[%s3387_s9 + $0x30] sm:$0xff] }
 0x339   :  { %v1237_v22 = vpop.f32.mrb[12].mxu0 }
 0x33a   :  { %v1244_v24 = vadd.f32 %v1237_v22, %v1146_v17  ;;  %v2538_v25 = vpop.f32.mrb[13].mxu0  ;;  %v2666_v17 = vpack.c.bf16 %v1617_v16, %v1616_v15 }
 0x33b   :  { %v1240_v26 = vpop.f32.mrb[14].mxu0 }
 0x33c   :  { %v3251_v27 = vadd.f32 %v2168_v23, %v1244_v24  ;;  %v1245_v28 = vadd.f32 %v1240_v26, %v1147_v21  ;;  %v2539_v29 = vpop.f32.mrb[15].mxu0  ;;  %v2660_v21 = vpack.c.bf16 %v1621_v19, %v1620_v18 }
 0x33e   :  { %v3253_v30 = vadd.f32 %v2168_v23, %v1245_v28  ;;  %v1256_v31 = vsel %vm1255_vm4, %v3251_v27, 0.0  ;;  %v1265_v32 = vmul.f32 %v3251_v27, %v3251_v27 }
 0x340   :  { %v1257_v33 = vsel %vm1255_vm4, %v3253_v30, 0.0  ;;  %v1266_v34 = vmul.f32 %v3253_v30, %v3253_v30  ;;  %v1267_v38 = vsel %vm1255_vm4, %v1265_v32, 0.0 }
 0x341   :  { %v1258_v35 = vadd.f32 %v1257_v33, %v1256_v31 }
 0x342   :  { %v1268_v36 = vsel %vm1255_vm4, %v1266_v34, 0.0 }
 0x343   :  { %v1259_v37 = vrot.slane %v1258_v35, 4  ;;  %v1269_v40 = vadd.f32 %v1268_v36, %v1267_v38 }
 0x345   :  { %v1260_v39 = vadd.f32 %v1259_v37, %v1258_v35  ;;  %v1270_v43 = vrot.slane %v1269_v40, 4 }
 0x347   :  { %v1261_v41 = vrot.slane %v1260_v39, 2  ;;  %v1271_v45 = vadd.f32 %v1270_v43, %v1269_v40  ;;  %v1778_v40 = vld [vmem:[%s3387_s9 + $0x40] sm:$0xff] }
 0x349   :  { %v1262_v42 = vadd.f32 %v1261_v41, %v1260_v39  ;;  %v1272_v47 = vrot.slane %v1271_v45, 2  ;;  %v1856_v39 = vld [vmem:[%s3387_s9 + $0x60] sm:$0xff]  ;;  %v1779_v41 = vld [vmem:[%s3387_s9 + $0x48] sm:$0xff] }
 0x34b   :  { %v1263_v44 = vrot.slane %v1262_v42, 1  ;;  %v1273_v48 = vadd.f32 %v1272_v47, %v1271_v45  ;;  %v1858_v45 = vld [vmem:[%s3387_s9 + $0x70] sm:$0xff]  ;;  %v2669_v47 = vpack.c.bf16 %v1779_v41, %v1778_v40 }
 0x34d   :  { %v1264_v46 = vadd.f32 %v1263_v44, %v1262_v42  ;;  %v1274_v49 = vrot.slane %v1273_v48, 1 }
 0x34f   :  { %2557 = vmatmul.mubr.msk.f32.vlgmr.msra.gmra.mrb[12].mxu1 %vm1255_vm4, %v1264_v46  ;;  %v1275_v50 = vadd.f32 %v1274_v49, %v1273_v48  ;;  %v1859_v46 = vld [vmem:[%s3387_s9 + $0x78] sm:$0xff]  ;;  %v1780_v49 = vld [vmem:[%s3387_s9 + $0x50] sm:$0xff] }
 0x350   :  { %2646 = vmatpush3.bf16.msra.mxu1 %v3216_v52  ;;  %2575 = vmatprep.mubr.msk.f32.mxu1 %vm2782_vm0, %v2781_v0 }
 0x351   :  { %2647 = vmatprep.subr.bf16.mxu1 %v2785_v53 }
 0x354   :  { %2649 = vmatpush3.bf16.msra.mxu1 %v3227_v56 }
 0x355   :  { %2650 = vmatprep.subr.bf16.mxu1 %v2785_v53 }
 0x358   :  { %2652 = vmatpush3.bf16.msra.mxu1 %v3237_v59 }
 0x359   :  { %2653 = vmatprep.subr.bf16.mxu1 %v2785_v53 }
 0x35c   :  { %2655 = vmatpush3.bf16.msra.mxu1 %v2642_v62 }
 0x35d   :  { %2656 = vmatprep.subr.bf16.mxu1 %v2785_v53 }
 0x35f   :  { %2576 = vmatmul.mubr.msk.f32.vlgmr.msra.gmra.mrb[14].mxu1 %vm1255_vm4, %v1275_v50  ;;  %v1781_v50 = vld [vmem:[%s3387_s9 + $0x58] sm:$0xff] }
 0x360   :  { %2596 = vmatprep.mubr.msk.f32.mxu1 %vm2782_vm0, %v2781_v0  ;;  %2658 = vmatpush3.bf16.msra.mxu1 %v2657_v13 }
 0x361   :  { %2659 = vmatprep.subr.bf16.mxu1 %v2785_v53 }
 0x364   :  { %2661 = vmatpush3.bf16.msra.mxu1 %v2660_v21 }
 0x365   :  { %2668 = vmatprep.subr.bf16.mxu1 %v2785_v53 }
 0x422   :  { %v1353_v52 = vpop.f32.mrb[12].mxu1 }
 0x423   :  { %v2558_v54 = vpop.f32.mrb[13].mxu1  ;;  %v1431_v55 = vmul.f32 0.0078125, %v1353_v52 }
 0x424   :  { %v2672_v54 = vpack.c.bf16 %v1781_v50, %v1780_v49 }
 0x425   :  { %v1433_v57 = vmul.f32 %v1431_v55, %v1431_v55 }
 0x432   :  { %v1426_v56 = vpop.f32.mrb[14].mxu1 }
 0x433   :  { %v1432_v58 = vmul.f32 0.0078125, %v1426_v56  ;;  %v2577_v59 = vpop.f32.mrb[15].mxu1  ;;  %v19_v56 = vstv %s3388_s13 }
 0x434   :  { %20 = vst [vmem:[#allocation3] sm:$0x1] %v19_v56 }
 0x435   :  { %v1434_v60 = vsub.f32 %v1432_v58, %v1433_v57 }
 0x437   :  { %v1435_v61 = vmax.f32 %v1434_v60, 0.0 }
 0x439   :  { %v1437_v62 = vadd.f32 1e-05, %v1435_v61 }
 0x43b   :  { %2773 = vrsqrt.f32 %v1437_v62 }
 0x445   :  { %v2774_v1 = vpop.eup %2773 }
 0x446   :  { %v1439_v2 = vmul.f32 %v2774_v1, %v1436_v63 }
 0x448   :  { %2581 = vmatmul.mubr.msk.f32.vlgmr.msra.gmra.mrb[16].mxu0 %vm1444_vm5, %v1439_v2  ;;  %v1441_v4 = vmul.f32 %v1439_v2, %v1431_v55  ;;  %v2177_v2 = vld [vmem:[%s3389_s10] ss:$0 sm:$0xff] }
 0x449   :  { %2584 = vmatpush3.msra.mxu0 %v1443_v51  ;;  %2585 = vmatprep.mubr.msk.f32.mxu0 %vm2782_vm0, %v2781_v0  ;;  %v2678_v51 = vpack.c.bf16 %v1859_v46, %v1858_v45 }
 0x44a   :  { %v1442_v5 = vsub.f32 %v1440_v3, %v1441_v4  ;;  %2662 = vmatprep.subr.bf16.mxu0 %v2785_v53 }
 0x44c   :  { %2586 = vmatmul.mubr.msk.f32.vlgmr.msra.gmra.mrb[18].mxu0 %vm1444_vm5, %v1442_v5 }
 0x44d   :  { %2607 = vmatprep.mubr.msk.f32.mxu0 %vm2782_vm0, %v2781_v0  ;;  %2664 = vmatpush3.bf16.msra.mxu0 %v2663_v8 }
 0x44e   :  { %2665 = vmatprep.subr.bf16.mxu0 %v2785_v53 }
 0x451   :  { %2667 = vmatpush3.bf16.msra.mxu0 %v2666_v17 }
 0x452   :  { %2674 = vmatprep.subr.bf16.mxu0 %v2785_v53 }
 0x51b   :  { %v1514_v20 = vpop.f32.mrb[16].mxu0 }
 0x51c   :  { %v1594_v22 = vrot.slane %v1514_v20, %v1593_v14  ;;  %v2582_v23 = vpop.f32.mrb[17].mxu0 }
 0x51e   :  { %v1595_v25 = vmul.f32 %v1594_v22, %v3251_v27  ;;  %v1596_v26 = vmul.f32 %v1594_v22, %v3253_v30  ;;  %v1857_v27 = vld [vmem:[%s3387_s9 + $0x68] sm:$0xff] }
 0x51f   :  { %v1587_v24 = vpop.f32.mrb[18].mxu0  ;;  %v2675_v42 = vpack.c.bf16 %v1857_v27, %v1856_v39 }
 0x520   :  { %v1600_v28 = vrot.slane %v1587_v24, %v1593_v14  ;;  %v2587_v29 = vpop.f32.mrb[19].mxu0 }
 0x522   :  { %v1601_v31 = vadd.f32 %v1600_v28, %v1595_v25  ;;  %v1602_v32 = vadd.f32 %v1600_v28, %v1596_v26  ;;  %v2178_v25 = vld [vmem:[%s3390_s11] ss:$0 sm:$0xff]  ;;  %v2179_v28 = vld [vmem:[%s3390_s11 + $0x1] ss:$0 sm:$0xff] }
 0x524   :  { %v1603_v33 = vmax.f32 %v1601_v31, 0.0  ;;  %v1604_v34 = vmax.f32 %v1602_v32, 0.0  ;;  %v2180_v32 = vld [vmem:[%s3391_s12] ss:$0 sm:$0xff] }
 0x526   :  { %1770 = vrot.lane.b32.xlu1 %v1604_v34, %s2786_s21  ;;  %1606 = vrot.lane.b32.xlu0 %v1603_v33, %s2786_s21 }
 0x598   :  { %v1771_v35 = vpop.permute.xlu1 %1770  ;;  %v1607_v36 = vpop.permute.xlu0 %1606 }
 0x599   :  { %v1773_v37 = vmax.f32 %v1604_v34, %v1771_v35  ;;  %v1609_v38 = vmax.f32 %v1603_v33, %v1607_v36  ;;  %v2181_v36 = vld [vmem:[#allocation3] ss:$0 sm:$0xff] }
 0x59b   :  { %v1611_v30 = vrot.slane %v1609_v38, 2  ;;  %v1775_v43 = vrot.slane %v1773_v37, 2 }
 0x59d   :  { %v1613_v44 = vmax.f32 %v1609_v38, %v1611_v30  ;;  %v1777_v52 = vmax.f32 %v1773_v37, %v1775_v43 }
 0x59f   :  { %v1623_v48 = vrot.slane %v1613_v44, 4  ;;  %2608 = vmatmul.mubr.msk.f32.vlgmr.msra.gmra.mrb[20].mxu0 %vm1624_vm6, %v1613_v44  ;;  %v1860_v55 = vrot.slane %v1777_v52, 4 }
 0x5a0   :  { %2676 = vmatpush3.bf16.msra.mxu0 %v2675_v42  ;;  %2629 = vmatprep.mubr.msk.f32.mxu0 %vm2782_vm0, %v2781_v0 }
 0x5a1   :  { %2597 = vmatmul.mubr.msk.f32.vlgmr.msra.gmra.mrb[16].mxu1 %vm1624_vm6, %v1623_v48  ;;  %2677 = vmatprep.subr.bf16.mxu0 %v2785_v53 }
 0x5a2   :  { %2670 = vmatpush3.bf16.msra.mxu1 %v2669_v47  ;;  %2618 = vmatprep.mubr.msk.f32.mxu1 %vm2782_vm0, %v2781_v0 }
 0x5a3   :  { %2671 = vmatprep.subr.bf16.mxu1 %v2785_v53 }
 0x5a4   :  { %2679 = vmatpush3.bf16.msra.mxu0 %v2678_v51 }
 0x5a6   :  { %2673 = vmatpush3.bf16.msra.mxu1 %v2672_v54 }
 0x5a7   :  { %2630 = vmatmul.mubr.msk.f32.vlgmr.msra.gmra.mrb[22].mxu0 %vm1624_vm6, %v1860_v55 }
 0x5a9   :  { %2619 = vmatmul.mubr.msk.f32.vlgmr.msra.gmra.mrb[18].mxu1 %vm1624_vm6, %v1777_v52 }
 0x672   :  { %v1765_v57 = vpop.f32.mrb[20].mxu0 }
 0x673   :  { %v2609_v58 = vpop.f32.mrb[21].mxu0 }
 0x674   :  { %v1693_v59 = vpop.f32.mrb[16].mxu1 }
 0x675   :  { %v1766_v60 = vadd.f32 %v1765_v57, %v1693_v59  ;;  %v2598_v61 = vpop.f32.mrb[17].mxu1 }
 0x67a   :  { %v1929_v0 = vpop.f32.mrb[22].mxu0 }
 0x67b   :  { %v2631_v62 = vpop.f32.mrb[23].mxu0 }
 0x67c   :  { %v1851_v53 = vpop.f32.mrb[18].mxu1 }
 0x67d   :  { %v1855_v63 = vadd.f32 %v1851_v53, %v1766_v60  ;;  %v2620_v1 = vpop.f32.mrb[19].mxu1 }
 0x67f   :  { %v1933_v3 = vadd.f32 %v1929_v0, %v1855_v63 }
 0x681   :  { %v1941_v4 = vadd.f32 %v2177_v2, %v1933_v3 }
 0x683   :  { %v1943_v5 = vsel %vm1942_vm7, %v1941_v4, 0.0 }
 0x684   :  { %v1944_v6 = vrot.slane %v1943_v5, 4 }
 0x686   :  { %v1945_v7 = vadd.f32 %v1944_v6, %v1943_v5 }
 0x688   :  { %v1946_v8 = vrot.slane %v1945_v7, 2 }
 0x68a   :  { %v1947_v9 = vadd.f32 %v1946_v8, %v1945_v7 }
 0x68c   :  { %v1948_v10 = vrot.slane %v1947_v9, 1 }
 0x68e   :  { %v1949_v11 = vadd.f32 %v1948_v10, %v1947_v9 }
 0x690   :  { %v1951_v12 = vmul.f32 0.5, %v1949_v11 }
 0x692   :  { %v1952_v13 = vsub.f32 %v1941_v4, %v1951_v12 }
 0x694   :  { %v1953_v14 = vmul.f32 %v1952_v13, %v1952_v13 }
 0x696   :  { %v1954_v15 = vsel %vm1942_vm7, %v1953_v14, 0.0 }
 0x697   :  { %v1955_v16 = vrot.slane %v1954_v15, 4 }
 0x699   :  { %v1956_v17 = vadd.f32 %v1955_v16, %v1954_v15 }
 0x69b   :  { %v1957_v18 = vrot.slane %v1956_v17, 2 }
 0x69d   :  { %v1958_v19 = vadd.f32 %v1957_v18, %v1956_v17 }
 0x69f   :  { %v1959_v20 = vrot.slane %v1958_v19, 1 }
 0x6a1   :  { %v1960_v21 = vadd.f32 %v1959_v20, %v1958_v19 }
 0x6a3   :  { %v1961_v22 = vmul.f32 0.5, %v1960_v21 }
 0x6a5   :  { %v1962_v23 = vadd.f32 1e-05, %v1961_v22 }
 0x6a7   :  { %2775 = vrsqrt.f32 %v1962_v23 }
 0x6b1   :  { %v2776_v24 = vpop.eup %2775 }
 0x6b2   :  { %v1964_v26 = vmul.f32 %v2776_v24, %v1952_v13 }
 0x6b4   :  { %v1970_v29 = vmul.f32 %v2178_v25, %v1964_v26 }
 0x6b6   :  { %v1976_v31 = vadd.f32 %v2179_v28, %v1970_v29 }
 0x6b8   :  { %v1977_v33 = vmax.f32 %v1976_v31, 0.0 }
 0x6ba   :  { %v1985_v34 = vmul.f32 %v2180_v32, %v1977_v33 }
 0x6bc   :  { %v1986_v35 = vsel %vm1942_vm7, %v1985_v34, 0.0 }
 0x6bd   :  { %1987 = vadd.xlane.f32.xlu0 %v1986_v35 }
 0x74a   :  { %v1988_v37 = vpop.xlane.xlu0 %1987 }
 0x74b   :  { %v1996_v38 = vadd.f32 %v2181_v36, %v1988_v37 }
 0x74d   :  { %v2182_v39 = vmul.f32 -1.442695, %v1996_v38 }
 0x74f   :  { %2777 = vpow2.f32 %v2182_v39 }
 0x759   :  { %v2778_v27 = vpop.eup %2777 }
 0x75a   :  { %v2000_v30 = vadd.f32 1.0, %v2778_v27 }
 0x75c   :  { %2779 = vrcp.f32 %v2000_v30 }
 0x766   :  { %v2780_v40 = vpop.eup %2779 }
 0x767   :  { %2004 = vst.msk [vmem:[%s3392_s14] sm:$0x3] %vm2003_vm8, %v2780_v40 }

</bundles_post_ra>
